<compile_context>
chip_gen: v6e
topology: v6e:2x2x1
jax: 0.10.0
libtpu: 0.0.40
codegen_flags: <defaults>
</compile_context>

<pallas_src>
import math
import functools

import jax
import jax.numpy as jnp
from jax.experimental import pallas as pl
from jax.experimental.pallas import tpu as pltpu


def _encoder_kernel(num_heads, head_dim, tb, npad, n_valid, e, h_ff, ffn_chunk,
                    x_ref,
                    wqkv_ref, bqkv_ref,
                    wc_ref, bc_ref,
                    gamma_ref, beta_ref,
                    w1_ref, b1_ref,
                    w2_ref, b2_ref,
                    out_ref,
                    attn_scr):
    m = tb * npad
    xb = x_ref[...].reshape(m, e)            # (m, E) bf16 (fold batch into M)
    xf = xb.astype(jnp.float32)              # f32 copy for residual / LayerNorm

    scale = 1.0 / math.sqrt(head_dim)

    # Fused QKV projection: one (m, E) @ (E, 3E) matmul, f32 accumulate.
    qkv = (jnp.dot(xb, wqkv_ref[...], preferred_element_type=jnp.float32)
           + bqkv_ref[...])
    q = qkv[:, :e] * scale                   # fold 1/sqrt(D) into q (O(m*E))
    k = qkv[:, e:2 * e]
    v = qkv[:, 2 * e:]

    # Per-head attention with batched (over TB) einsums.  Each head's output is
    # written into a bf16 VMEM scratch at lane offset h*D so the concat
    # projection is a single full-contraction (m,E)@(E,E) matmul.
    if npad != n_valid:
        key_ids = jax.lax.broadcasted_iota(jnp.int32, (1, 1, npad), 2)
        key_mask = key_ids < n_valid          # mask out padded key columns

    for h in range(num_heads):
        lo = h * head_dim
        hi = lo + head_dim
        qh = q[:, lo:hi].reshape(tb, npad, head_dim).astype(jnp.bfloat16)
        kh = k[:, lo:hi].reshape(tb, npad, head_dim).astype(jnp.bfloat16)
        vh = v[:, lo:hi].reshape(tb, npad, head_dim).astype(jnp.bfloat16)

        s = jnp.einsum('bnd,bmd->bnm', qh, kh,
                       preferred_element_type=jnp.float32)      # (TB, Np, Np)
        if npad != n_valid:
            s = jnp.where(key_mask, s, -1e30)
        s = s - jnp.max(s, axis=-1, keepdims=True)
        p = jnp.exp(s)
        p = p * pl.reciprocal(jnp.sum(p, axis=-1, keepdims=True), approx=True)

        ah = jnp.einsum('bnm,bmd->bnd', p.astype(jnp.bfloat16), vh,
                        preferred_element_type=jnp.float32)     # (TB, Np, D)
        attn_scr[:, lo:hi] = ah.reshape(m, head_dim).astype(jnp.bfloat16)

    attn_proj = (jnp.dot(attn_scr[...], wc_ref[...],
                         preferred_element_type=jnp.float32) + bc_ref[...])

    # Residual + LayerNorm (eps=1e-5, biased variance, like torch.nn.LayerNorm).
    y = attn_proj + xf
    mean = jnp.mean(y, axis=-1, keepdims=True)
    cen = y - mean
    var = jnp.mean(cen * cen, axis=-1, keepdims=True)
    yn = cen * jax.lax.rsqrt(var + 1e-5)
    yn = yn * gamma_ref[...] + beta_ref[...]
    yb = yn.astype(jnp.bfloat16)

    # Feedforward: Linear -> exact erf GELU (matches torch.nn.GELU()) -> Linear,
    # tiled over the hidden dimension so the full f32 (m, H_ff) activation is
    # never live at once.
    inv_sqrt2 = 1.0 / math.sqrt(2.0)
    acc = jnp.zeros((m, e), jnp.float32)
    for lo in range(0, h_ff, ffn_chunk):
        hi = min(lo + ffn_chunk, h_ff)
        h1 = (jnp.dot(yb, w1_ref[:, lo:hi], preferred_element_type=jnp.float32)
              + b1_ref[:, lo:hi])
        h1 = 0.5 * h1 * (1.0 + jax.lax.erf(h1 * inv_sqrt2))
        acc = acc + jnp.dot(h1.astype(jnp.bfloat16), w2_ref[lo:hi, :],
                            preferred_element_type=jnp.float32)
    out = acc + b2_ref[...]

    out_ref[...] = out.reshape(tb, npad, e).astype(out_ref.dtype)


def _tpu_budget():
    """Generation-aware VMEM budget and batch-block target (v7x has 64 MiB VMEM)."""
    try:
        vmem_phys = int(pltpu.get_tpu_info().vmem_capacity_bytes)
    except Exception:
        vmem_phys = 64 * 1024 * 1024   # conservative fallback (assume v7x-sized)
    vmem_limit = min((vmem_phys * 3) // 4, 96 * 1024 * 1024)
    target_m = 256 if vmem_phys <= 64 * 1024 * 1024 else 1024
    return vmem_limit, target_m


def encoder_forward(emb, params, num_heads):
    """emb: (B, N, E) float32. params: dict of weights (in, out) & biases."""
    B, N, E = emb.shape
    H_ff = params["w1"].shape[1]
    head_dim = E // num_heads

    vmem_limit, target_m = _tpu_budget()

    # Pad N to a sublane multiple so (TB, Np, E) -> (TB*Np, E) is a clean fold;
    # padded key columns are masked before softmax inside the kernel.
    npad = ((N + 7) // 8) * 8

    # Batch-block size: fold batch elements so TB*Np approaches target_m, but
    # keep the grid >= 2 so dual-TC chips (v7x) can shard batch blocks.
    tb = max(1, min(B, target_m // max(npad, 1)))
    if B > 1:
        tb = min(tb, pl.cdiv(B, 2))
    grid_b = pl.cdiv(B, tb)
    b_pad = grid_b * tb

    # DMA activations as bf16 (upcast in-kernel for residual / LayerNorm).
    emb_bf = emb.astype(jnp.bfloat16)
    if b_pad != B or npad != N:
        emb_bf = jnp.pad(emb_bf, ((0, b_pad - B), (0, npad - N), (0, 0)))

    # bf16 matmul operands (f32 accumulate inside the kernel); biases stay f32.
    wqkv = jnp.concatenate(
        [params["wq"], params["wk"], params["wv"]], axis=1).astype(jnp.bfloat16)
    bqkv = jnp.concatenate([params["bq"], params["bk"], params["bv"]], axis=1)
    wc = params["wc"].astype(jnp.bfloat16)
    w1 = params["w1"].astype(jnp.bfloat16)
    w2 = params["w2"].astype(jnp.bfloat16)

    ffn_chunk = min(H_ff, 512)

    kernel = functools.partial(_encoder_kernel, num_heads, head_dim, tb, npad,
                               N, E, H_ff, ffn_chunk)

    def _run(use_buffered):
        def const_spec(shape):
            idx = lambda b: (0, 0)
            if use_buffered:
                # Constant index_map -> single-buffer (no double-buffer VMEM waste).
                return pl.BlockSpec(shape, idx, pipeline_mode=pl.Buffered(1))
            return pl.BlockSpec(shape, idx)

        in_specs = [
            pl.BlockSpec((tb, npad, E), lambda b: (b, 0, 0)),   # emb block (bf16)
            const_spec((E, 3 * E)), const_spec((1, 3 * E)),     # Wqkv, bqkv
            const_spec((E, E)), const_spec((1, E)),             # Wc, bc
            const_spec((1, E)), const_spec((1, E)),             # gamma, beta
            const_spec((E, H_ff)), const_spec((1, H_ff)),       # W1, b1
            const_spec((H_ff, E)), const_spec((1, E)),          # W2, b2
        ]

        call = pl.pallas_call(
            kernel,
            out_shape=jax.ShapeDtypeStruct((b_pad, npad, E), emb.dtype),
            grid_spec=pltpu.PrefetchScalarGridSpec(
                num_scalar_prefetch=0,
                grid=(grid_b,),
                in_specs=in_specs,
                out_specs=pl.BlockSpec((tb, npad, E), lambda b: (b, 0, 0)),
                scratch_shapes=[pltpu.VMEM((tb * npad, E), jnp.bfloat16)],
            ),
            compiler_params=pltpu.CompilerParams(
                dimension_semantics=("parallel",),
                vmem_limit_bytes=int(vmem_limit)),
        )
        out = call(emb_bf, wqkv, bqkv, wc, params["bc"],
                   params["gamma"], params["beta"],
                   w1, params["b1"], w2, params["b2"])
        return jax.block_until_ready(out)

    try:
        out = _run(True)
    except Exception:
        # TODO(synk): this jax build rejected pl.Buffered(1) single-buffering;
        # fall back to default double-buffered weight blocks.
        out = _run(False)

    if b_pad != B or npad != N:
        out = out[:B, :N, :]
    return out


def _reference_forward(emb, params, num_heads):
    """Plain-JAX (f32) reference mirroring the PyTorch forward, for verification."""
    B, N, E = emb.shape
    D = E // num_heads

    def lin(x, w, b):
        return x @ w + b[0]

    q = lin(emb, params["wq"], params["bq"]).reshape(B, N, num_heads, D).transpose(0, 2, 1, 3)
    k = lin(emb, params["wk"], params["bk"]).reshape(B, N, num_heads, D).transpose(0, 2, 1, 3)
    v = lin(emb, params["wv"], params["bv"]).reshape(B, N, num_heads, D).transpose(0, 2, 1, 3)
    s = jnp.einsum("bhnd,bhmd->bhnm", q, k) / math.sqrt(D)
    p = jax.nn.softmax(s, axis=-1)
    a = jnp.einsum("bhnm,bhmd->bhnd", p, v).transpose(0, 2, 1, 3).reshape(B, N, E)
    a = lin(a, params["wc"], params["bc"])
    y = a + emb
    mean = jnp.mean(y, axis=-1, keepdims=True)
    var = jnp.mean((y - mean) ** 2, axis=-1, keepdims=True)
    y = (y - mean) / jnp.sqrt(var + 1e-5) * params["gamma"][0] + params["beta"][0]
    h1 = lin(y, params["w1"], params["b1"])
    h1 = 0.5 * h1 * (1.0 + jax.lax.erf(h1 / math.sqrt(2.0)))
    return lin(h1, params["w2"], params["b2"])


def _init_params(key, emb_dim, hidden_dim_ff):
    ks = jax.random.split(key, 12)
    scale = 0.05
    p = {
        # weights stored as (in_features, out_features)
        "wq": jax.random.normal(ks[0], (emb_dim, emb_dim), jnp.float32) * scale,
        "bq": jax.random.normal(ks[1], (1, emb_dim), jnp.float32) * scale,
        "wk": jax.random.normal(ks[2], (emb_dim, emb_dim), jnp.float32) * scale,
        "bk": jax.random.normal(ks[3], (1, emb_dim), jnp.float32) * scale,
        "wv": jax.random.normal(ks[4], (emb_dim, emb_dim), jnp.float32) * scale,
        "bv": jax.random.normal(ks[5], (1, emb_dim), jnp.float32) * scale,
        "wc": jax.random.normal(ks[6], (emb_dim, emb_dim), jnp.float32) * scale,
        "bc": jax.random.normal(ks[7], (1, emb_dim), jnp.float32) * scale,
        "gamma": jnp.ones((1, emb_dim), jnp.float32),
        "beta": jnp.zeros((1, emb_dim), jnp.float32),
        "w1": jax.random.normal(ks[8], (emb_dim, hidden_dim_ff), jnp.float32) * scale,
        "b1": jax.random.normal(ks[9], (1, hidden_dim_ff), jnp.float32) * scale,
        "w2": jax.random.normal(ks[10], (hidden_dim_ff, emb_dim), jnp.float32) * scale,
        "b2": jax.random.normal(ks[11], (1, emb_dim), jnp.float32) * scale,
    }
    # NOTE: `attn_embedding_bias` exists in __init__ but is unused in forward(); omitted.
    return p


if __name__ == "__main__":
    B, N, E = 2, 8, 32          # batch, num_patches, emb_dim
    NUM_HEADS = 4
    HIDDEN_FF = 64

    key = jax.random.PRNGKey(0)
    k_emb, k_par = jax.random.split(key)
    emb = jax.random.normal(k_emb, (B, N, E), jnp.float32)
    params = _init_params(k_par, E, HIDDEN_FF)

    out = encoder_forward(emb, params, NUM_HEADS)
    out = jax.block_until_ready(out)

    ref = _reference_forward(emb, params, NUM_HEADS)
    assert out.shape == (B, N, E)
    # Tolerance widened (vs. pure-f32) because matmul operands (and the
    # DMA'd activations) are bf16 with f32 accumulation; elementwise math is f32.
    max_diff = jnp.max(jnp.abs(out - ref))
    assert jnp.allclose(out, ref, atol=3e-2, rtol=3e-2), f"max abs diff {max_diff}"

    print("KERNEL_OK")
</pallas_src>

<mosaic_0001>
module attributes {stable_mosaic.version = 11 : i64} {
  func.func @_encoder_kernel(%arg0: i32, %arg1: memref<1x8x32xbf16, #tpu.memory_space<vmem>>, %arg2: memref<32x96xbf16, #tpu.memory_space<vmem>>, %arg3: memref<1x96xf32, #tpu.memory_space<vmem>>, %arg4: memref<32x32xbf16, #tpu.memory_space<vmem>>, %arg5: memref<1x32xf32, #tpu.memory_space<vmem>>, %arg6: memref<1x32xf32, #tpu.memory_space<vmem>>, %arg7: memref<1x32xf32, #tpu.memory_space<vmem>>, %arg8: memref<32x64xbf16, #tpu.memory_space<vmem>>, %arg9: memref<1x64xf32, #tpu.memory_space<vmem>>, %arg10: memref<64x32xbf16, #tpu.memory_space<vmem>>, %arg11: memref<1x32xf32, #tpu.memory_space<vmem>>, %arg12: memref<1x8x32xf32, #tpu.memory_space<vmem>>, %arg13: memref<8x32xbf16, #tpu.memory_space<vmem>>) attributes {dimension_semantics = [#tpu.dimension_semantics<parallel>], iteration_bounds = array<i64: 2>, scalar_prefetch = 0 : i64, scratch_operands = 1 : i64, tpu.core_type = #tpu.core_type<tc>, window_params = [{transform_indices = @transform_0, window_bounds = array<i64: 1, 8, 32>}, {pipeline_mode = #tpu.pipeline_mode<synchronous>, transform_indices = @transform_1, window_bounds = array<i64: 32, 96>}, {pipeline_mode = #tpu.pipeline_mode<synchronous>, transform_indices = @transform_2, window_bounds = array<i64: 1, 96>}, {pipeline_mode = #tpu.pipeline_mode<synchronous>, transform_indices = @transform_3, window_bounds = array<i64: 32, 32>}, {pipeline_mode = #tpu.pipeline_mode<synchronous>, transform_indices = @transform_4, window_bounds = array<i64: 1, 32>}, {pipeline_mode = #tpu.pipeline_mode<synchronous>, transform_indices = @transform_5, window_bounds = array<i64: 1, 32>}, {pipeline_mode = #tpu.pipeline_mode<synchronous>, transform_indices = @transform_6, window_bounds = array<i64: 1, 32>}, {pipeline_mode = #tpu.pipeline_mode<synchronous>, transform_indices = @transform_7, window_bounds = array<i64: 32, 64>}, {pipeline_mode = #tpu.pipeline_mode<synchronous>, transform_indices = @transform_8, window_bounds = array<i64: 1, 64>}, {pipeline_mode = #tpu.pipeline_mode<synchronous>, transform_indices = @transform_9, window_bounds = array<i64: 64, 32>}, {pipeline_mode = #tpu.pipeline_mode<synchronous>, transform_indices = @transform_10, window_bounds = array<i64: 1, 32>}, {transform_indices = @transform_11, window_bounds = array<i64: 1, 8, 32>}]} {
    %c0 = arith.constant 0 : index
    %c0_0 = arith.constant 0 : index
    %c0_1 = arith.constant 0 : index
    %0 = vector.load %arg1[%c0, %c0_0, %c0_1] : memref<1x8x32xbf16, #tpu.memory_space<vmem>>, vector<1x8x32xbf16>
    %1 = vector.shape_cast %0 : vector<1x8x32xbf16> to vector<8x32xbf16>
    %2 = arith.extf %1 : vector<8x32xbf16> to vector<8x32xf32>
    %c0_2 = arith.constant 0 : index
    %c0_3 = arith.constant 0 : index
    %3 = vector.load %arg2[%c0_2, %c0_3] : memref<32x96xbf16, #tpu.memory_space<vmem>>, vector<32x96xbf16>
    %cst = arith.constant dense<0.000000e+00> : vector<8x96xf32>
    %4 = tpu.matmul %1, %3, %cst {dimension_numbers = #tpu.dot_dimension_numbers<[1], [0], [0], [1], [0, 0, 1, 1], [], []>} : vector<8x32xbf16>, vector<32x96xbf16>, vector<8x96xf32> -> vector<8x96xf32>
    %c0_4 = arith.constant 0 : index
    %c0_5 = arith.constant 0 : index
    %5 = vector.load %arg3[%c0_4, %c0_5] : memref<1x96xf32, #tpu.memory_space<vmem>>, vector<1x96xf32>
    %6 = vector.broadcast %5 : vector<1x96xf32> to vector<8x96xf32>
    %7 = arith.addf %4, %6 : vector<8x96xf32>
    %8 = vector.extract_strided_slice %7 {offsets = [0, 0], sizes = [8, 32], strides = [1, 1]} : vector<8x96xf32> to vector<8x32xf32>
    %cst_6 = arith.constant 0.353553385 : f32
    %9 = vector.broadcast %cst_6 : f32 to vector<8x32xf32>
    %10 = arith.mulf %8, %9 : vector<8x32xf32>
    %11 = vector.extract_strided_slice %7 {offsets = [0, 32], sizes = [8, 32], strides = [1, 1]} : vector<8x96xf32> to vector<8x32xf32>
    %12 = vector.extract_strided_slice %7 {offsets = [0, 64], sizes = [8, 32], strides = [1, 1]} : vector<8x96xf32> to vector<8x32xf32>
    %13 = vector.extract_strided_slice %10 {offsets = [0, 0], sizes = [8, 8], strides = [1, 1]} : vector<8x32xf32> to vector<8x8xf32>
    %14 = vector.shape_cast %13 : vector<8x8xf32> to vector<1x8x8xf32>
    %15 = arith.truncf %14 : vector<1x8x8xf32> to vector<1x8x8xbf16>
    %16 = vector.extract_strided_slice %11 {offsets = [0, 0], sizes = [8, 8], strides = [1, 1]} : vector<8x32xf32> to vector<8x8xf32>
    %17 = vector.shape_cast %16 : vector<8x8xf32> to vector<1x8x8xf32>
    %18 = arith.truncf %17 : vector<1x8x8xf32> to vector<1x8x8xbf16>
    %19 = vector.extract_strided_slice %12 {offsets = [0, 0], sizes = [8, 8], strides = [1, 1]} : vector<8x32xf32> to vector<8x8xf32>
    %20 = vector.shape_cast %19 : vector<8x8xf32> to vector<1x8x8xf32>
    %21 = arith.truncf %20 : vector<1x8x8xf32> to vector<1x8x8xbf16>
    "tpu.trace_start"() <{level = 10 : i32, message = "bnd,bmd->bnm"}> : () -> ()
    %cst_7 = arith.constant dense<0.000000e+00> : vector<1x8x8xf32>
    %22 = tpu.matmul %15, %18, %cst_7 {dimension_numbers = #tpu.dot_dimension_numbers<[2], [2], [1], [1], [0, 0, 0, 1, 1, 1], [0], [0]>} : vector<1x8x8xbf16>, vector<1x8x8xbf16>, vector<1x8x8xf32> -> vector<1x8x8xf32>
    "tpu.trace_stop"() : () -> ()
    %cst_8 = arith.constant dense<0xFF800000> : vector<1x8xf32>
    %23 = vector.multi_reduction <maximumf>, %22, %cst_8 [2] : vector<1x8x8xf32> to vector<1x8xf32>
    %24 = vector.shape_cast %23 : vector<1x8xf32> to vector<1x8x1xf32>
    %25 = vector.broadcast %24 : vector<1x8x1xf32> to vector<1x8x8xf32>
    %26 = arith.subf %22, %25 : vector<1x8x8xf32>
    %27 = math.exp %26 : vector<1x8x8xf32>
    %cst_9 = arith.constant dense<0.000000e+00> : vector<1x8xf32>
    %28 = vector.multi_reduction <add>, %27, %cst_9 [2] : vector<1x8x8xf32> to vector<1x8xf32>
    %29 = vector.shape_cast %28 : vector<1x8xf32> to vector<1x8x1xf32>
    %30 = tpu.reciprocal %29 {approx = true} : vector<1x8x1xf32> -> vector<1x8x1xf32>
    %31 = vector.broadcast %30 : vector<1x8x1xf32> to vector<1x8x8xf32>
    %32 = arith.mulf %27, %31 : vector<1x8x8xf32>
    %33 = arith.truncf %32 : vector<1x8x8xf32> to vector<1x8x8xbf16>
    "tpu.trace_start"() <{level = 10 : i32, message = "bnm,bmd->bnd"}> : () -> ()
    %cst_10 = arith.constant dense<0.000000e+00> : vector<1x8x8xf32>
    %34 = tpu.matmul %33, %21, %cst_10 {dimension_numbers = #tpu.dot_dimension_numbers<[2], [1], [1], [2], [0, 0, 0, 1, 1, 2], [0], [0]>} : vector<1x8x8xbf16>, vector<1x8x8xbf16>, vector<1x8x8xf32> -> vector<1x8x8xf32>
    "tpu.trace_stop"() : () -> ()
    %35 = vector.shape_cast %34 : vector<1x8x8xf32> to vector<8x8xf32>
    %36 = arith.truncf %35 : vector<8x8xf32> to vector<8x8xbf16>
    %c0_11 = arith.constant 0 : index
    %c0_12 = arith.constant 0 : index
    %37 = vector.load %arg13[%c0_11, %c0_12] : memref<8x32xbf16, #tpu.memory_space<vmem>>, vector<8x8xbf16>
    tpu.vector_store %arg13[%c0_11, %c0_12], %36 {strides = array<i32>} : memref<8x32xbf16, #tpu.memory_space<vmem>>, vector<8x8xbf16>,
    %38 = vector.extract_strided_slice %10 {offsets = [0, 8], sizes = [8, 8], strides = [1, 1]} : vector<8x32xf32> to vector<8x8xf32>
    %39 = vector.shape_cast %38 : vector<8x8xf32> to vector<1x8x8xf32>
    %40 = arith.truncf %39 : vector<1x8x8xf32> to vector<1x8x8xbf16>
    %41 = vector.extract_strided_slice %11 {offsets = [0, 8], sizes = [8, 8], strides = [1, 1]} : vector<8x32xf32> to vector<8x8xf32>
    %42 = vector.shape_cast %41 : vector<8x8xf32> to vector<1x8x8xf32>
    %43 = arith.truncf %42 : vector<1x8x8xf32> to vector<1x8x8xbf16>
    %44 = vector.extract_strided_slice %12 {offsets = [0, 8], sizes = [8, 8], strides = [1, 1]} : vector<8x32xf32> to vector<8x8xf32>
    %45 = vector.shape_cast %44 : vector<8x8xf32> to vector<1x8x8xf32>
    %46 = arith.truncf %45 : vector<1x8x8xf32> to vector<1x8x8xbf16>
    "tpu.trace_start"() <{level = 10 : i32, message = "bnd,bmd->bnm"}> : () -> ()
    %cst_13 = arith.constant dense<0.000000e+00> : vector<1x8x8xf32>
    %47 = tpu.matmul %40, %43, %cst_13 {dimension_numbers = #tpu.dot_dimension_numbers<[2], [2], [1], [1], [0, 0, 0, 1, 1, 1], [0], [0]>} : vector<1x8x8xbf16>, vector<1x8x8xbf16>, vector<1x8x8xf32> -> vector<1x8x8xf32>
    "tpu.trace_stop"() : () -> ()
    %cst_14 = arith.constant dense<0xFF800000> : vector<1x8xf32>
    %48 = vector.multi_reduction <maximumf>, %47, %cst_14 [2] : vector<1x8x8xf32> to vector<1x8xf32>
    %49 = vector.shape_cast %48 : vector<1x8xf32> to vector<1x8x1xf32>
    %50 = vector.broadcast %49 : vector<1x8x1xf32> to vector<1x8x8xf32>
    %51 = arith.subf %47, %50 : vector<1x8x8xf32>
    %52 = math.exp %51 : vector<1x8x8xf32>
    %cst_15 = arith.constant dense<0.000000e+00> : vector<1x8xf32>
    %53 = vector.multi_reduction <add>, %52, %cst_15 [2] : vector<1x8x8xf32> to vector<1x8xf32>
    %54 = vector.shape_cast %53 : vector<1x8xf32> to vector<1x8x1xf32>
    %55 = tpu.reciprocal %54 {approx = true} : vector<1x8x1xf32> -> vector<1x8x1xf32>
    %56 = vector.broadcast %55 : vector<1x8x1xf32> to vector<1x8x8xf32>
    %57 = arith.mulf %52, %56 : vector<1x8x8xf32>
    %58 = arith.truncf %57 : vector<1x8x8xf32> to vector<1x8x8xbf16>
    "tpu.trace_start"() <{level = 10 : i32, message = "bnm,bmd->bnd"}> : () -> ()
    %cst_16 = arith.constant dense<0.000000e+00> : vector<1x8x8xf32>
    %59 = tpu.matmul %58, %46, %cst_16 {dimension_numbers = #tpu.dot_dimension_numbers<[2], [1], [1], [2], [0, 0, 0, 1, 1, 2], [0], [0]>} : vector<1x8x8xbf16>, vector<1x8x8xbf16>, vector<1x8x8xf32> -> vector<1x8x8xf32>
    "tpu.trace_stop"() : () -> ()
    %60 = vector.shape_cast %59 : vector<1x8x8xf32> to vector<8x8xf32>
    %61 = arith.truncf %60 : vector<8x8xf32> to vector<8x8xbf16>
    %c0_17 = arith.constant 0 : index
    %c8 = arith.constant 8 : index
    %62 = vector.load %arg13[%c0_17, %c8] : memref<8x32xbf16, #tpu.memory_space<vmem>>, vector<8x8xbf16>
    tpu.vector_store %arg13[%c0_17, %c8], %61 {strides = array<i32>} : memref<8x32xbf16, #tpu.memory_space<vmem>>, vector<8x8xbf16>,
    %63 = vector.extract_strided_slice %10 {offsets = [0, 16], sizes = [8, 8], strides = [1, 1]} : vector<8x32xf32> to vector<8x8xf32>
    %64 = vector.shape_cast %63 : vector<8x8xf32> to vector<1x8x8xf32>
    %65 = arith.truncf %64 : vector<1x8x8xf32> to vector<1x8x8xbf16>
    %66 = vector.extract_strided_slice %11 {offsets = [0, 16], sizes = [8, 8], strides = [1, 1]} : vector<8x32xf32> to vector<8x8xf32>
    %67 = vector.shape_cast %66 : vector<8x8xf32> to vector<1x8x8xf32>
    %68 = arith.truncf %67 : vector<1x8x8xf32> to vector<1x8x8xbf16>
    %69 = vector.extract_strided_slice %12 {offsets = [0, 16], sizes = [8, 8], strides = [1, 1]} : vector<8x32xf32> to vector<8x8xf32>
    %70 = vector.shape_cast %69 : vector<8x8xf32> to vector<1x8x8xf32>
    %71 = arith.truncf %70 : vector<1x8x8xf32> to vector<1x8x8xbf16>
    "tpu.trace_start"() <{level = 10 : i32, message = "bnd,bmd->bnm"}> : () -> ()
    %cst_18 = arith.constant dense<0.000000e+00> : vector<1x8x8xf32>
    %72 = tpu.matmul %65, %68, %cst_18 {dimension_numbers = #tpu.dot_dimension_numbers<[2], [2], [1], [1], [0, 0, 0, 1, 1, 1], [0], [0]>} : vector<1x8x8xbf16>, vector<1x8x8xbf16>, vector<1x8x8xf32> -> vector<1x8x8xf32>
    "tpu.trace_stop"() : () -> ()
    %cst_19 = arith.constant dense<0xFF800000> : vector<1x8xf32>
    %73 = vector.multi_reduction <maximumf>, %72, %cst_19 [2] : vector<1x8x8xf32> to vector<1x8xf32>
    %74 = vector.shape_cast %73 : vector<1x8xf32> to vector<1x8x1xf32>
    %75 = vector.broadcast %74 : vector<1x8x1xf32> to vector<1x8x8xf32>
    %76 = arith.subf %72, %75 : vector<1x8x8xf32>
    %77 = math.exp %76 : vector<1x8x8xf32>
    %cst_20 = arith.constant dense<0.000000e+00> : vector<1x8xf32>
    %78 = vector.multi_reduction <add>, %77, %cst_20 [2] : vector<1x8x8xf32> to vector<1x8xf32>
    %79 = vector.shape_cast %78 : vector<1x8xf32> to vector<1x8x1xf32>
    %80 = tpu.reciprocal %79 {approx = true} : vector<1x8x1xf32> -> vector<1x8x1xf32>
    %81 = vector.broadcast %80 : vector<1x8x1xf32> to vector<1x8x8xf32>
    %82 = arith.mulf %77, %81 : vector<1x8x8xf32>
    %83 = arith.truncf %82 : vector<1x8x8xf32> to vector<1x8x8xbf16>
    "tpu.trace_start"() <{level = 10 : i32, message = "bnm,bmd->bnd"}> : () -> ()
    %cst_21 = arith.constant dense<0.000000e+00> : vector<1x8x8xf32>
    %84 = tpu.matmul %83, %71, %cst_21 {dimension_numbers = #tpu.dot_dimension_numbers<[2], [1], [1], [2], [0, 0, 0, 1, 1, 2], [0], [0]>} : vector<1x8x8xbf16>, vector<1x8x8xbf16>, vector<1x8x8xf32> -> vector<1x8x8xf32>
    "tpu.trace_stop"() : () -> ()
    %85 = vector.shape_cast %84 : vector<1x8x8xf32> to vector<8x8xf32>
    %86 = arith.truncf %85 : vector<8x8xf32> to vector<8x8xbf16>
    %c0_22 = arith.constant 0 : index
    %c16 = arith.constant 16 : index
    %87 = vector.load %arg13[%c0_22, %c16] : memref<8x32xbf16, #tpu.memory_space<vmem>>, vector<8x8xbf16>
    tpu.vector_store %arg13[%c0_22, %c16], %86 {strides = array<i32>} : memref<8x32xbf16, #tpu.memory_space<vmem>>, vector<8x8xbf16>,
    %88 = vector.extract_strided_slice %10 {offsets = [0, 24], sizes = [8, 8], strides = [1, 1]} : vector<8x32xf32> to vector<8x8xf32>
    %89 = vector.shape_cast %88 : vector<8x8xf32> to vector<1x8x8xf32>
    %90 = arith.truncf %89 : vector<1x8x8xf32> to vector<1x8x8xbf16>
    %91 = vector.extract_strided_slice %11 {offsets = [0, 24], sizes = [8, 8], strides = [1, 1]} : vector<8x32xf32> to vector<8x8xf32>
    %92 = vector.shape_cast %91 : vector<8x8xf32> to vector<1x8x8xf32>
    %93 = arith.truncf %92 : vector<1x8x8xf32> to vector<1x8x8xbf16>
    %94 = vector.extract_strided_slice %12 {offsets = [0, 24], sizes = [8, 8], strides = [1, 1]} : vector<8x32xf32> to vector<8x8xf32>
    %95 = vector.shape_cast %94 : vector<8x8xf32> to vector<1x8x8xf32>
    %96 = arith.truncf %95 : vector<1x8x8xf32> to vector<1x8x8xbf16>
    "tpu.trace_start"() <{level = 10 : i32, message = "bnd,bmd->bnm"}> : () -> ()
    %cst_23 = arith.constant dense<0.000000e+00> : vector<1x8x8xf32>
    %97 = tpu.matmul %90, %93, %cst_23 {dimension_numbers = #tpu.dot_dimension_numbers<[2], [2], [1], [1], [0, 0, 0, 1, 1, 1], [0], [0]>} : vector<1x8x8xbf16>, vector<1x8x8xbf16>, vector<1x8x8xf32> -> vector<1x8x8xf32>
    "tpu.trace_stop"() : () -> ()
    %cst_24 = arith.constant dense<0xFF800000> : vector<1x8xf32>
    %98 = vector.multi_reduction <maximumf>, %97, %cst_24 [2] : vector<1x8x8xf32> to vector<1x8xf32>
    %99 = vector.shape_cast %98 : vector<1x8xf32> to vector<1x8x1xf32>
    %100 = vector.broadcast %99 : vector<1x8x1xf32> to vector<1x8x8xf32>
    %101 = arith.subf %97, %100 : vector<1x8x8xf32>
    %102 = math.exp %101 : vector<1x8x8xf32>
    %cst_25 = arith.constant dense<0.000000e+00> : vector<1x8xf32>
    %103 = vector.multi_reduction <add>, %102, %cst_25 [2] : vector<1x8x8xf32> to vector<1x8xf32>
    %104 = vector.shape_cast %103 : vector<1x8xf32> to vector<1x8x1xf32>
    %105 = tpu.reciprocal %104 {approx = true} : vector<1x8x1xf32> -> vector<1x8x1xf32>
    %106 = vector.broadcast %105 : vector<1x8x1xf32> to vector<1x8x8xf32>
    %107 = arith.mulf %102, %106 : vector<1x8x8xf32>
    %108 = arith.truncf %107 : vector<1x8x8xf32> to vector<1x8x8xbf16>
    "tpu.trace_start"() <{level = 10 : i32, message = "bnm,bmd->bnd"}> : () -> ()
    %cst_26 = arith.constant dense<0.000000e+00> : vector<1x8x8xf32>
    %109 = tpu.matmul %108, %96, %cst_26 {dimension_numbers = #tpu.dot_dimension_numbers<[2], [1], [1], [2], [0, 0, 0, 1, 1, 2], [0], [0]>} : vector<1x8x8xbf16>, vector<1x8x8xbf16>, vector<1x8x8xf32> -> vector<1x8x8xf32>
    "tpu.trace_stop"() : () -> ()
    %110 = vector.shape_cast %109 : vector<1x8x8xf32> to vector<8x8xf32>
    %111 = arith.truncf %110 : vector<8x8xf32> to vector<8x8xbf16>
    %c0_27 = arith.constant 0 : index
    %c24 = arith.constant 24 : index
    %112 = vector.load %arg13[%c0_27, %c24] : memref<8x32xbf16, #tpu.memory_space<vmem>>, vector<8x8xbf16>
    tpu.vector_store %arg13[%c0_27, %c24], %111 {strides = array<i32>} : memref<8x32xbf16, #tpu.memory_space<vmem>>, vector<8x8xbf16>,
    %c0_28 = arith.constant 0 : index
    %c0_29 = arith.constant 0 : index
    %113 = vector.load %arg13[%c0_28, %c0_29] : memref<8x32xbf16, #tpu.memory_space<vmem>>, vector<8x32xbf16>
    %c0_30 = arith.constant 0 : index
    %c0_31 = arith.constant 0 : index
    %114 = vector.load %arg4[%c0_30, %c0_31] : memref<32x32xbf16, #tpu.memory_space<vmem>>, vector<32x32xbf16>
    %cst_32 = arith.constant dense<0.000000e+00> : vector<8x32xf32>
    %115 = tpu.matmul %113, %114, %cst_32 {dimension_numbers = #tpu.dot_dimension_numbers<[1], [0], [0], [1], [0, 0, 1, 1], [], []>} : vector<8x32xbf16>, vector<32x32xbf16>, vector<8x32xf32> -> vector<8x32xf32>
    %c0_33 = arith.constant 0 : index
    %c0_34 = arith.constant 0 : index
    %116 = vector.load %arg5[%c0_33, %c0_34] : memref<1x32xf32, #tpu.memory_space<vmem>>, vector<1x32xf32>
    %117 = vector.broadcast %116 : vector<1x32xf32> to vector<8x32xf32>
    %118 = arith.addf %115, %117 : vector<8x32xf32>
    %119 = arith.addf %118, %2 : vector<8x32xf32>
    %cst_35 = arith.constant dense<0.000000e+00> : vector<8xf32>
    %120 = vector.multi_reduction <add>, %119, %cst_35 [1] : vector<8x32xf32> to vector<8xf32>
    %121 = vector.shape_cast %120 : vector<8xf32> to vector<8x1xf32>
    %cst_36 = arith.constant 3.200000e+01 : f32
    %122 = vector.broadcast %cst_36 : f32 to vector<8x1xf32>
    %123 = arith.divf %121, %122 : vector<8x1xf32>
    %124 = vector.broadcast %123 : vector<8x1xf32> to vector<8x32xf32>
    %125 = arith.subf %119, %124 : vector<8x32xf32>
    %126 = arith.mulf %125, %125 : vector<8x32xf32>
    %cst_37 = arith.constant dense<0.000000e+00> : vector<8xf32>
    %127 = vector.multi_reduction <add>, %126, %cst_37 [1] : vector<8x32xf32> to vector<8xf32>
    %128 = vector.shape_cast %127 : vector<8xf32> to vector<8x1xf32>
    %cst_38 = arith.constant 3.200000e+01 : f32
    %129 = vector.broadcast %cst_38 : f32 to vector<8x1xf32>
    %130 = arith.divf %128, %129 : vector<8x1xf32>
    %cst_39 = arith.constant 9.99999974E-6 : f32
    %131 = vector.broadcast %cst_39 : f32 to vector<8x1xf32>
    %132 = arith.addf %130, %131 : vector<8x1xf32>
    %133 = math.rsqrt %132 : vector<8x1xf32>
    %134 = vector.broadcast %133 : vector<8x1xf32> to vector<8x32xf32>
    %135 = arith.mulf %125, %134 : vector<8x32xf32>
    %c0_40 = arith.constant 0 : index
    %c0_41 = arith.constant 0 : index
    %136 = vector.load %arg6[%c0_40, %c0_41] : memref<1x32xf32, #tpu.memory_space<vmem>>, vector<1x32xf32>
    %137 = vector.broadcast %136 : vector<1x32xf32> to vector<8x32xf32>
    %138 = arith.mulf %135, %137 : vector<8x32xf32>
    %c0_42 = arith.constant 0 : index
    %c0_43 = arith.constant 0 : index
    %139 = vector.load %arg7[%c0_42, %c0_43] : memref<1x32xf32, #tpu.memory_space<vmem>>, vector<1x32xf32>
    %140 = vector.broadcast %139 : vector<1x32xf32> to vector<8x32xf32>
    %141 = arith.addf %138, %140 : vector<8x32xf32>
    %142 = arith.truncf %141 : vector<8x32xf32> to vector<8x32xbf16>
    %cst_44 = arith.constant 0.000000e+00 : f32
    %143 = vector.broadcast %cst_44 : f32 to vector<8x32xf32>
    %c0_45 = arith.constant 0 : index
    %c0_46 = arith.constant 0 : index
    %144 = vector.load %arg8[%c0_45, %c0_46] : memref<32x64xbf16, #tpu.memory_space<vmem>>, vector<32x64xbf16>
    %cst_47 = arith.constant dense<0.000000e+00> : vector<8x64xf32>
    %145 = tpu.matmul %142, %144, %cst_47 {dimension_numbers = #tpu.dot_dimension_numbers<[1], [0], [0], [1], [0, 0, 1, 1], [], []>} : vector<8x32xbf16>, vector<32x64xbf16>, vector<8x64xf32> -> vector<8x64xf32>
    %c0_48 = arith.constant 0 : index
    %c0_49 = arith.constant 0 : index
    %146 = vector.load %arg9[%c0_48, %c0_49] : memref<1x64xf32, #tpu.memory_space<vmem>>, vector<1x64xf32>
    %147 = vector.broadcast %146 : vector<1x64xf32> to vector<8x64xf32>
    %148 = arith.addf %145, %147 : vector<8x64xf32>
    %cst_50 = arith.constant 5.000000e-01 : f32
    %149 = vector.broadcast %cst_50 : f32 to vector<8x64xf32>
    %150 = arith.mulf %149, %148 : vector<8x64xf32>
    %cst_51 = arith.constant 0.707106769 : f32
    %151 = vector.broadcast %cst_51 : f32 to vector<8x64xf32>
    %152 = arith.mulf %148, %151 : vector<8x64xf32>
    %153 = math.erf %152 : vector<8x64xf32>
    %cst_52 = arith.constant 1.000000e+00 : f32
    %154 = vector.broadcast %cst_52 : f32 to vector<8x64xf32>
    %155 = arith.addf %154, %153 : vector<8x64xf32>
    %156 = arith.mulf %150, %155 : vector<8x64xf32>
    %157 = arith.truncf %156 : vector<8x64xf32> to vector<8x64xbf16>
    %c0_53 = arith.constant 0 : index
    %c0_54 = arith.constant 0 : index
    %158 = vector.load %arg10[%c0_53, %c0_54] : memref<64x32xbf16, #tpu.memory_space<vmem>>, vector<64x32xbf16>
    %cst_55 = arith.constant dense<0.000000e+00> : vector<8x32xf32>
    %159 = tpu.matmul %157, %158, %cst_55 {dimension_numbers = #tpu.dot_dimension_numbers<[1], [0], [0], [1], [0, 0, 1, 1], [], []>} : vector<8x64xbf16>, vector<64x32xbf16>, vector<8x32xf32> -> vector<8x32xf32>
    %160 = arith.addf %143, %159 : vector<8x32xf32>
    %c0_56 = arith.constant 0 : index
    %c0_57 = arith.constant 0 : index
    %161 = vector.load %arg11[%c0_56, %c0_57] : memref<1x32xf32, #tpu.memory_space<vmem>>, vector<1x32xf32>
    %162 = vector.broadcast %161 : vector<1x32xf32> to vector<8x32xf32>
    %163 = arith.addf %160, %162 : vector<8x32xf32>
    %164 = vector.shape_cast %163 : vector<8x32xf32> to vector<1x8x32xf32>
    %c0_58 = arith.constant 0 : index
    %c0_59 = arith.constant 0 : index
    %c0_60 = arith.constant 0 : index
    %165 = vector.load %arg12[%c0_58, %c0_59, %c0_60] : memref<1x8x32xf32, #tpu.memory_space<vmem>>, vector<1x8x32xf32>
    tpu.vector_store %arg12[%c0_58, %c0_59, %c0_60], %164 {strides = array<i32>} : memref<1x8x32xf32, #tpu.memory_space<vmem>>, vector<1x8x32xf32>,
    return
  }
  func.func @transform_0(%arg0: i32) -> (i32, i32, i32) {
    %c0_i32 = arith.constant 0 : i32
    %c0_i32_0 = arith.constant 0 : i32
    %c0_i32_1 = arith.constant 0 : i32
    return %arg0, %c0_i32, %c0_i32_0 : i32, i32, i32
  }
  func.func @transform_1(%arg0: i32) -> (i32, i32) {
    %c0_i32 = arith.constant 0 : i32
    %c0_i32_0 = arith.constant 0 : i32
    %c0_i32_1 = arith.constant 0 : i32
    return %c0_i32, %c0_i32_0 : i32, i32
  }
  func.func @transform_2(%arg0: i32) -> (i32, i32) {
    %c0_i32 = arith.constant 0 : i32
    %c0_i32_0 = arith.constant 0 : i32
    %c0_i32_1 = arith.constant 0 : i32
    return %c0_i32, %c0_i32_0 : i32, i32
  }
  func.func @transform_3(%arg0: i32) -> (i32, i32) {
    %c0_i32 = arith.constant 0 : i32
    %c0_i32_0 = arith.constant 0 : i32
    %c0_i32_1 = arith.constant 0 : i32
    return %c0_i32, %c0_i32_0 : i32, i32
  }
  func.func @transform_4(%arg0: i32) -> (i32, i32) {
    %c0_i32 = arith.constant 0 : i32
    %c0_i32_0 = arith.constant 0 : i32
    %c0_i32_1 = arith.constant 0 : i32
    return %c0_i32, %c0_i32_0 : i32, i32
  }
  func.func @transform_5(%arg0: i32) -> (i32, i32) {
    %c0_i32 = arith.constant 0 : i32
    %c0_i32_0 = arith.constant 0 : i32
    %c0_i32_1 = arith.constant 0 : i32
    return %c0_i32, %c0_i32_0 : i32, i32
  }
  func.func @transform_6(%arg0: i32) -> (i32, i32) {
    %c0_i32 = arith.constant 0 : i32
    %c0_i32_0 = arith.constant 0 : i32
    %c0_i32_1 = arith.constant 0 : i32
    return %c0_i32, %c0_i32_0 : i32, i32
  }
  func.func @transform_7(%arg0: i32) -> (i32, i32) {
    %c0_i32 = arith.constant 0 : i32
    %c0_i32_0 = arith.constant 0 : i32
    %c0_i32_1 = arith.constant 0 : i32
    return %c0_i32, %c0_i32_0 : i32, i32
  }
  func.func @transform_8(%arg0: i32) -> (i32, i32) {
    %c0_i32 = arith.constant 0 : i32
    %c0_i32_0 = arith.constant 0 : i32
    %c0_i32_1 = arith.constant 0 : i32
    return %c0_i32, %c0_i32_0 : i32, i32
  }
  func.func @transform_9(%arg0: i32) -> (i32, i32) {
    %c0_i32 = arith.constant 0 : i32
    %c0_i32_0 = arith.constant 0 : i32
    %c0_i32_1 = arith.constant 0 : i32
    return %c0_i32, %c0_i32_0 : i32, i32
  }
  func.func @transform_10(%arg0: i32) -> (i32, i32) {
    %c0_i32 = arith.constant 0 : i32
    %c0_i32_0 = arith.constant 0 : i32
    %c0_i32_1 = arith.constant 0 : i32
    return %c0_i32, %c0_i32_0 : i32, i32
  }
  func.func @transform_11(%arg0: i32) -> (i32, i32, i32) {
    %c0_i32 = arith.constant 0 : i32
    %c0_i32_0 = arith.constant 0 : i32
    %c0_i32_1 = arith.constant 0 : i32
    return %arg0, %c0_i32, %c0_i32_0 : i32, i32, i32
  }
}

module attributes {stable_mosaic.version = 11 : i64} {
  func.func @_encoder_kernel(%arg0: i32, %arg1: memref<1x8x32xbf16, #tpu.memory_space<vmem>>, %arg2: memref<32x96xbf16, #tpu.memory_space<vmem>>, %arg3: memref<1x96xf32, #tpu.memory_space<vmem>>, %arg4: memref<32x32xbf16, #tpu.memory_space<vmem>>, %arg5: memref<1x32xf32, #tpu.memory_space<vmem>>, %arg6: memref<1x32xf32, #tpu.memory_space<vmem>>, %arg7: memref<1x32xf32, #tpu.memory_space<vmem>>, %arg8: memref<32x64xbf16, #tpu.memory_space<vmem>>, %arg9: memref<1x64xf32, #tpu.memory_space<vmem>>, %arg10: memref<64x32xbf16, #tpu.memory_space<vmem>>, %arg11: memref<1x32xf32, #tpu.memory_space<vmem>>, %arg12: memref<1x8x32xf32, #tpu.memory_space<vmem>>, %arg13: memref<8x32xbf16, #tpu.memory_space<vmem>>) attributes {dimension_semantics = [#tpu.dimension_semantics<parallel>], iteration_bounds = array<i64: 2>, scalar_prefetch = 0 : i64, scratch_operands = 1 : i64, tpu.core_type = #tpu.core_type<tc>, window_params = [{transform_indices = @transform_0, window_bounds = array<i64: 1, 8, 32>}, {pipeline_mode = #tpu.pipeline_mode<synchronous>, transform_indices = @transform_1, window_bounds = array<i64: 32, 96>}, {pipeline_mode = #tpu.pipeline_mode<synchronous>, transform_indices = @transform_2, window_bounds = array<i64: 1, 96>}, {pipeline_mode = #tpu.pipeline_mode<synchronous>, transform_indices = @transform_3, window_bounds = array<i64: 32, 32>}, {pipeline_mode = #tpu.pipeline_mode<synchronous>, transform_indices = @transform_4, window_bounds = array<i64: 1, 32>}, {pipeline_mode = #tpu.pipeline_mode<synchronous>, transform_indices = @transform_5, window_bounds = array<i64: 1, 32>}, {pipeline_mode = #tpu.pipeline_mode<synchronous>, transform_indices = @transform_6, window_bounds = array<i64: 1, 32>}, {pipeline_mode = #tpu.pipeline_mode<synchronous>, transform_indices = @transform_7, window_bounds = array<i64: 32, 64>}, {pipeline_mode = #tpu.pipeline_mode<synchronous>, transform_indices = @transform_8, window_bounds = array<i64: 1, 64>}, {pipeline_mode = #tpu.pipeline_mode<synchronous>, transform_indices = @transform_9, window_bounds = array<i64: 64, 32>}, {pipeline_mode = #tpu.pipeline_mode<synchronous>, transform_indices = @transform_10, window_bounds = array<i64: 1, 32>}, {transform_indices = @transform_11, window_bounds = array<i64: 1, 8, 32>}]} {
    %c0 = arith.constant 0 : index
    %c0_0 = arith.constant 0 : index
    %c0_1 = arith.constant 0 : index
    %0 = vector.load %arg1[%c0, %c0_0, %c0_1] : memref<1x8x32xbf16, #tpu.memory_space<vmem>>, vector<1x8x32xbf16>
    %1 = vector.shape_cast %0 : vector<1x8x32xbf16> to vector<8x32xbf16>
    %2 = arith.extf %1 : vector<8x32xbf16> to vector<8x32xf32>
    %c0_2 = arith.constant 0 : index
    %c0_3 = arith.constant 0 : index
    %3 = vector.load %arg2[%c0_2, %c0_3] : memref<32x96xbf16, #tpu.memory_space<vmem>>, vector<32x96xbf16>
    %cst = arith.constant dense<0.000000e+00> : vector<8x96xf32>
    %4 = tpu.matmul %1, %3, %cst {dimension_numbers = #tpu.dot_dimension_numbers<[1], [0], [0], [1], [0, 0, 1, 1], [], []>} : vector<8x32xbf16>, vector<32x96xbf16>, vector<8x96xf32> -> vector<8x96xf32>
    %c0_4 = arith.constant 0 : index
    %c0_5 = arith.constant 0 : index
    %5 = vector.load %arg3[%c0_4, %c0_5] : memref<1x96xf32, #tpu.memory_space<vmem>>, vector<1x96xf32>
    %6 = vector.broadcast %5 : vector<1x96xf32> to vector<8x96xf32>
    %7 = arith.addf %4, %6 : vector<8x96xf32>
    %8 = vector.extract_strided_slice %7 {offsets = [0, 0], sizes = [8, 32], strides = [1, 1]} : vector<8x96xf32> to vector<8x32xf32>
    %cst_6 = arith.constant 0.353553385 : f32
    %9 = vector.broadcast %cst_6 : f32 to vector<8x32xf32>
    %10 = arith.mulf %8, %9 : vector<8x32xf32>
    %11 = vector.extract_strided_slice %7 {offsets = [0, 32], sizes = [8, 32], strides = [1, 1]} : vector<8x96xf32> to vector<8x32xf32>
    %12 = vector.extract_strided_slice %7 {offsets = [0, 64], sizes = [8, 32], strides = [1, 1]} : vector<8x96xf32> to vector<8x32xf32>
    %13 = vector.extract_strided_slice %10 {offsets = [0, 0], sizes = [8, 8], strides = [1, 1]} : vector<8x32xf32> to vector<8x8xf32>
    %14 = vector.shape_cast %13 : vector<8x8xf32> to vector<1x8x8xf32>
    %15 = arith.truncf %14 : vector<1x8x8xf32> to vector<1x8x8xbf16>
    %16 = vector.extract_strided_slice %11 {offsets = [0, 0], sizes = [8, 8], strides = [1, 1]} : vector<8x32xf32> to vector<8x8xf32>
    %17 = vector.shape_cast %16 : vector<8x8xf32> to vector<1x8x8xf32>
    %18 = arith.truncf %17 : vector<1x8x8xf32> to vector<1x8x8xbf16>
    %19 = vector.extract_strided_slice %12 {offsets = [0, 0], sizes = [8, 8], strides = [1, 1]} : vector<8x32xf32> to vector<8x8xf32>
    %20 = vector.shape_cast %19 : vector<8x8xf32> to vector<1x8x8xf32>
    %21 = arith.truncf %20 : vector<1x8x8xf32> to vector<1x8x8xbf16>
    "tpu.trace_start"() <{level = 10 : i32, message = "bnd,bmd->bnm"}> : () -> ()
    %cst_7 = arith.constant dense<0.000000e+00> : vector<1x8x8xf32>
    %22 = tpu.matmul %15, %18, %cst_7 {dimension_numbers = #tpu.dot_dimension_numbers<[2], [2], [1], [1], [0, 0, 0, 1, 1, 1], [0], [0]>} : vector<1x8x8xbf16>, vector<1x8x8xbf16>, vector<1x8x8xf32> -> vector<1x8x8xf32>
    "tpu.trace_stop"() : () -> ()
    %cst_8 = arith.constant dense<0xFF800000> : vector<1x8xf32>
    %23 = vector.multi_reduction <maximumf>, %22, %cst_8 [2] : vector<1x8x8xf32> to vector<1x8xf32>
    %24 = vector.shape_cast %23 : vector<1x8xf32> to vector<1x8x1xf32>
    %25 = vector.broadcast %24 : vector<1x8x1xf32> to vector<1x8x8xf32>
    %26 = arith.subf %22, %25 : vector<1x8x8xf32>
    %27 = math.exp %26 : vector<1x8x8xf32>
    %cst_9 = arith.constant dense<0.000000e+00> : vector<1x8xf32>
    %28 = vector.multi_reduction <add>, %27, %cst_9 [2] : vector<1x8x8xf32> to vector<1x8xf32>
    %29 = vector.shape_cast %28 : vector<1x8xf32> to vector<1x8x1xf32>
    %30 = tpu.reciprocal %29 {approx = true} : vector<1x8x1xf32> -> vector<1x8x1xf32>
    %31 = vector.broadcast %30 : vector<1x8x1xf32> to vector<1x8x8xf32>
    %32 = arith.mulf %27, %31 : vector<1x8x8xf32>
    %33 = arith.truncf %32 : vector<1x8x8xf32> to vector<1x8x8xbf16>
    "tpu.trace_start"() <{level = 10 : i32, message = "bnm,bmd->bnd"}> : () -> ()
    %cst_10 = arith.constant dense<0.000000e+00> : vector<1x8x8xf32>
    %34 = tpu.matmul %33, %21, %cst_10 {dimension_numbers = #tpu.dot_dimension_numbers<[2], [1], [1], [2], [0, 0, 0, 1, 1, 2], [0], [0]>} : vector<1x8x8xbf16>, vector<1x8x8xbf16>, vector<1x8x8xf32> -> vector<1x8x8xf32>
    "tpu.trace_stop"() : () -> ()
    %35 = vector.shape_cast %34 : vector<1x8x8xf32> to vector<8x8xf32>
    %36 = arith.truncf %35 : vector<8x8xf32> to vector<8x8xbf16>
    %c0_11 = arith.constant 0 : index
    %c0_12 = arith.constant 0 : index
    %37 = vector.load %arg13[%c0_11, %c0_12] : memref<8x32xbf16, #tpu.memory_space<vmem>>, vector<8x8xbf16>
    tpu.vector_store %arg13[%c0_11, %c0_12], %36 {strides = array<i32>} : memref<8x32xbf16, #tpu.memory_space<vmem>>, vector<8x8xbf16>,
    %38 = vector.extract_strided_slice %10 {offsets = [0, 8], sizes = [8, 8], strides = [1, 1]} : vector<8x32xf32> to vector<8x8xf32>
    %39 = vector.shape_cast %38 : vector<8x8xf32> to vector<1x8x8xf32>
    %40 = arith.truncf %39 : vector<1x8x8xf32> to vector<1x8x8xbf16>
    %41 = vector.extract_strided_slice %11 {offsets = [0, 8], sizes = [8, 8], strides = [1, 1]} : vector<8x32xf32> to vector<8x8xf32>
    %42 = vector.shape_cast %41 : vector<8x8xf32> to vector<1x8x8xf32>
    %43 = arith.truncf %42 : vector<1x8x8xf32> to vector<1x8x8xbf16>
    %44 = vector.extract_strided_slice %12 {offsets = [0, 8], sizes = [8, 8], strides = [1, 1]} : vector<8x32xf32> to vector<8x8xf32>
    %45 = vector.shape_cast %44 : vector<8x8xf32> to vector<1x8x8xf32>
    %46 = arith.truncf %45 : vector<1x8x8xf32> to vector<1x8x8xbf16>
    "tpu.trace_start"() <{level = 10 : i32, message = "bnd,bmd->bnm"}> : () -> ()
    %cst_13 = arith.constant dense<0.000000e+00> : vector<1x8x8xf32>
    %47 = tpu.matmul %40, %43, %cst_13 {dimension_numbers = #tpu.dot_dimension_numbers<[2], [2], [1], [1], [0, 0, 0, 1, 1, 1], [0], [0]>} : vector<1x8x8xbf16>, vector<1x8x8xbf16>, vector<1x8x8xf32> -> vector<1x8x8xf32>
    "tpu.trace_stop"() : () -> ()
    %cst_14 = arith.constant dense<0xFF800000> : vector<1x8xf32>
    %48 = vector.multi_reduction <maximumf>, %47, %cst_14 [2] : vector<1x8x8xf32> to vector<1x8xf32>
    %49 = vector.shape_cast %48 : vector<1x8xf32> to vector<1x8x1xf32>
    %50 = vector.broadcast %49 : vector<1x8x1xf32> to vector<1x8x8xf32>
    %51 = arith.subf %47, %50 : vector<1x8x8xf32>
    %52 = math.exp %51 : vector<1x8x8xf32>
    %cst_15 = arith.constant dense<0.000000e+00> : vector<1x8xf32>
    %53 = vector.multi_reduction <add>, %52, %cst_15 [2] : vector<1x8x8xf32> to vector<1x8xf32>
    %54 = vector.shape_cast %53 : vector<1x8xf32> to vector<1x8x1xf32>
    %55 = tpu.reciprocal %54 {approx = true} : vector<1x8x1xf32> -> vector<1x8x1xf32>
    %56 = vector.broadcast %55 : vector<1x8x1xf32> to vector<1x8x8xf32>
    %57 = arith.mulf %52, %56 : vector<1x8x8xf32>
    %58 = arith.truncf %57 : vector<1x8x8xf32> to vector<1x8x8xbf16>
    "tpu.trace_start"() <{level = 10 : i32, message = "bnm,bmd->bnd"}> : () -> ()
    %cst_16 = arith.constant dense<0.000000e+00> : vector<1x8x8xf32>
    %59 = tpu.matmul %58, %46, %cst_16 {dimension_numbers = #tpu.dot_dimension_numbers<[2], [1], [1], [2], [0, 0, 0, 1, 1, 2], [0], [0]>} : vector<1x8x8xbf16>, vector<1x8x8xbf16>, vector<1x8x8xf32> -> vector<1x8x8xf32>
    "tpu.trace_stop"() : () -> ()
    %60 = vector.shape_cast %59 : vector<1x8x8xf32> to vector<8x8xf32>
    %61 = arith.truncf %60 : vector<8x8xf32> to vector<8x8xbf16>
    %c0_17 = arith.constant 0 : index
    %c8 = arith.constant 8 : index
    %62 = vector.load %arg13[%c0_17, %c8] : memref<8x32xbf16, #tpu.memory_space<vmem>>, vector<8x8xbf16>
    tpu.vector_store %arg13[%c0_17, %c8], %61 {strides = array<i32>} : memref<8x32xbf16, #tpu.memory_space<vmem>>, vector<8x8xbf16>,
    %63 = vector.extract_strided_slice %10 {offsets = [0, 16], sizes = [8, 8], strides = [1, 1]} : vector<8x32xf32> to vector<8x8xf32>
    %64 = vector.shape_cast %63 : vector<8x8xf32> to vector<1x8x8xf32>
    %65 = arith.truncf %64 : vector<1x8x8xf32> to vector<1x8x8xbf16>
    %66 = vector.extract_strided_slice %11 {offsets = [0, 16], sizes = [8, 8], strides = [1, 1]} : vector<8x32xf32> to vector<8x8xf32>
    %67 = vector.shape_cast %66 : vector<8x8xf32> to vector<1x8x8xf32>
    %68 = arith.truncf %67 : vector<1x8x8xf32> to vector<1x8x8xbf16>
    %69 = vector.extract_strided_slice %12 {offsets = [0, 16], sizes = [8, 8], strides = [1, 1]} : vector<8x32xf32> to vector<8x8xf32>
    %70 = vector.shape_cast %69 : vector<8x8xf32> to vector<1x8x8xf32>
    %71 = arith.truncf %70 : vector<1x8x8xf32> to vector<1x8x8xbf16>
    "tpu.trace_start"() <{level = 10 : i32, message = "bnd,bmd->bnm"}> : () -> ()
    %cst_18 = arith.constant dense<0.000000e+00> : vector<1x8x8xf32>
    %72 = tpu.matmul %65, %68, %cst_18 {dimension_numbers = #tpu.dot_dimension_numbers<[2], [2], [1], [1], [0, 0, 0, 1, 1, 1], [0], [0]>} : vector<1x8x8xbf16>, vector<1x8x8xbf16>, vector<1x8x8xf32> -> vector<1x8x8xf32>
    "tpu.trace_stop"() : () -> ()
    %cst_19 = arith.constant dense<0xFF800000> : vector<1x8xf32>
    %73 = vector.multi_reduction <maximumf>, %72, %cst_19 [2] : vector<1x8x8xf32> to vector<1x8xf32>
    %74 = vector.shape_cast %73 : vector<1x8xf32> to vector<1x8x1xf32>
    %75 = vector.broadcast %74 : vector<1x8x1xf32> to vector<1x8x8xf32>
    %76 = arith.subf %72, %75 : vector<1x8x8xf32>
    %77 = math.exp %76 : vector<1x8x8xf32>
    %cst_20 = arith.constant dense<0.000000e+00> : vector<1x8xf32>
    %78 = vector.multi_reduction <add>, %77, %cst_20 [2] : vector<1x8x8xf32> to vector<1x8xf32>
    %79 = vector.shape_cast %78 : vector<1x8xf32> to vector<1x8x1xf32>
    %80 = tpu.reciprocal %79 {approx = true} : vector<1x8x1xf32> -> vector<1x8x1xf32>
    %81 = vector.broadcast %80 : vector<1x8x1xf32> to vector<1x8x8xf32>
    %82 = arith.mulf %77, %81 : vector<1x8x8xf32>
    %83 = arith.truncf %82 : vector<1x8x8xf32> to vector<1x8x8xbf16>
    "tpu.trace_start"() <{level = 10 : i32, message = "bnm,bmd->bnd"}> : () -> ()
    %cst_21 = arith.constant dense<0.000000e+00> : vector<1x8x8xf32>
    %84 = tpu.matmul %83, %71, %cst_21 {dimension_numbers = #tpu.dot_dimension_numbers<[2], [1], [1], [2], [0, 0, 0, 1, 1, 2], [0], [0]>} : vector<1x8x8xbf16>, vector<1x8x8xbf16>, vector<1x8x8xf32> -> vector<1x8x8xf32>
    "tpu.trace_stop"() : () -> ()
    %85 = vector.shape_cast %84 : vector<1x8x8xf32> to vector<8x8xf32>
    %86 = arith.truncf %85 : vector<8x8xf32> to vector<8x8xbf16>
    %c0_22 = arith.constant 0 : index
    %c16 = arith.constant 16 : index
    %87 = vector.load %arg13[%c0_22, %c16] : memref<8x32xbf16, #tpu.memory_space<vmem>>, vector<8x8xbf16>
    tpu.vector_store %arg13[%c0_22, %c16], %86 {strides = array<i32>} : memref<8x32xbf16, #tpu.memory_space<vmem>>, vector<8x8xbf16>,
    %88 = vector.extract_strided_slice %10 {offsets = [0, 24], sizes = [8, 8], strides = [1, 1]} : vector<8x32xf32> to vector<8x8xf32>
    %89 = vector.shape_cast %88 : vector<8x8xf32> to vector<1x8x8xf32>
    %90 = arith.truncf %89 : vector<1x8x8xf32> to vector<1x8x8xbf16>
    %91 = vector.extract_strided_slice %11 {offsets = [0, 24], sizes = [8, 8], strides = [1, 1]} : vector<8x32xf32> to vector<8x8xf32>
    %92 = vector.shape_cast %91 : vector<8x8xf32> to vector<1x8x8xf32>
    %93 = arith.truncf %92 : vector<1x8x8xf32> to vector<1x8x8xbf16>
    %94 = vector.extract_strided_slice %12 {offsets = [0, 24], sizes = [8, 8], strides = [1, 1]} : vector<8x32xf32> to vector<8x8xf32>
    %95 = vector.shape_cast %94 : vector<8x8xf32> to vector<1x8x8xf32>
    %96 = arith.truncf %95 : vector<1x8x8xf32> to vector<1x8x8xbf16>
    "tpu.trace_start"() <{level = 10 : i32, message = "bnd,bmd->bnm"}> : () -> ()
    %cst_23 = arith.constant dense<0.000000e+00> : vector<1x8x8xf32>
    %97 = tpu.matmul %90, %93, %cst_23 {dimension_numbers = #tpu.dot_dimension_numbers<[2], [2], [1], [1], [0, 0, 0, 1, 1, 1], [0], [0]>} : vector<1x8x8xbf16>, vector<1x8x8xbf16>, vector<1x8x8xf32> -> vector<1x8x8xf32>
    "tpu.trace_stop"() : () -> ()
    %cst_24 = arith.constant dense<0xFF800000> : vector<1x8xf32>
    %98 = vector.multi_reduction <maximumf>, %97, %cst_24 [2] : vector<1x8x8xf32> to vector<1x8xf32>
    %99 = vector.shape_cast %98 : vector<1x8xf32> to vector<1x8x1xf32>
    %100 = vector.broadcast %99 : vector<1x8x1xf32> to vector<1x8x8xf32>
    %101 = arith.subf %97, %100 : vector<1x8x8xf32>
    %102 = math.exp %101 : vector<1x8x8xf32>
    %cst_25 = arith.constant dense<0.000000e+00> : vector<1x8xf32>
    %103 = vector.multi_reduction <add>, %102, %cst_25 [2] : vector<1x8x8xf32> to vector<1x8xf32>
    %104 = vector.shape_cast %103 : vector<1x8xf32> to vector<1x8x1xf32>
    %105 = tpu.reciprocal %104 {approx = true} : vector<1x8x1xf32> -> vector<1x8x1xf32>
    %106 = vector.broadcast %105 : vector<1x8x1xf32> to vector<1x8x8xf32>
    %107 = arith.mulf %102, %106 : vector<1x8x8xf32>
    %108 = arith.truncf %107 : vector<1x8x8xf32> to vector<1x8x8xbf16>
    "tpu.trace_start"() <{level = 10 : i32, message = "bnm,bmd->bnd"}> : () -> ()
    %cst_26 = arith.constant dense<0.000000e+00> : vector<1x8x8xf32>
    %109 = tpu.matmul %108, %96, %cst_26 {dimension_numbers = #tpu.dot_dimension_numbers<[2], [1], [1], [2], [0, 0, 0, 1, 1, 2], [0], [0]>} : vector<1x8x8xbf16>, vector<1x8x8xbf16>, vector<1x8x8xf32> -> vector<1x8x8xf32>
    "tpu.trace_stop"() : () -> ()
    %110 = vector.shape_cast %109 : vector<1x8x8xf32> to vector<8x8xf32>
    %111 = arith.truncf %110 : vector<8x8xf32> to vector<8x8xbf16>
    %c0_27 = arith.constant 0 : index
    %c24 = arith.constant 24 : index
    %112 = vector.load %arg13[%c0_27, %c24] : memref<8x32xbf16, #tpu.memory_space<vmem>>, vector<8x8xbf16>
    tpu.vector_store %arg13[%c0_27, %c24], %111 {strides = array<i32>} : memref<8x32xbf16, #tpu.memory_space<vmem>>, vector<8x8xbf16>,
    %c0_28 = arith.constant 0 : index
    %c0_29 = arith.constant 0 : index
    %113 = vector.load %arg13[%c0_28, %c0_29] : memref<8x32xbf16, #tpu.memory_space<vmem>>, vector<8x32xbf16>
    %c0_30 = arith.constant 0 : index
    %c0_31 = arith.constant 0 : index
    %114 = vector.load %arg4[%c0_30, %c0_31] : memref<32x32xbf16, #tpu.memory_space<vmem>>, vector<32x32xbf16>
    %cst_32 = arith.constant dense<0.000000e+00> : vector<8x32xf32>
    %115 = tpu.matmul %113, %114, %cst_32 {dimension_numbers = #tpu.dot_dimension_numbers<[1], [0], [0], [1], [0, 0, 1, 1], [], []>} : vector<8x32xbf16>, vector<32x32xbf16>, vector<8x32xf32> -> vector<8x32xf32>
    %c0_33 = arith.constant 0 : index
    %c0_34 = arith.constant 0 : index
    %116 = vector.load %arg5[%c0_33, %c0_34] : memref<1x32xf32, #tpu.memory_space<vmem>>, vector<1x32xf32>
    %117 = vector.broadcast %116 : vector<1x32xf32> to vector<8x32xf32>
    %118 = arith.addf %115, %117 : vector<8x32xf32>
    %119 = arith.addf %118, %2 : vector<8x32xf32>
    %cst_35 = arith.constant dense<0.000000e+00> : vector<8xf32>
    %120 = vector.multi_reduction <add>, %119, %cst_35 [1] : vector<8x32xf32> to vector<8xf32>
    %121 = vector.shape_cast %120 : vector<8xf32> to vector<8x1xf32>
    %cst_36 = arith.constant 3.200000e+01 : f32
    %122 = vector.broadcast %cst_36 : f32 to vector<8x1xf32>
    %123 = arith.divf %121, %122 : vector<8x1xf32>
    %124 = vector.broadcast %123 : vector<8x1xf32> to vector<8x32xf32>
    %125 = arith.subf %119, %124 : vector<8x32xf32>
    %126 = arith.mulf %125, %125 : vector<8x32xf32>
    %cst_37 = arith.constant dense<0.000000e+00> : vector<8xf32>
    %127 = vector.multi_reduction <add>, %126, %cst_37 [1] : vector<8x32xf32> to vector<8xf32>
    %128 = vector.shape_cast %127 : vector<8xf32> to vector<8x1xf32>
    %cst_38 = arith.constant 3.200000e+01 : f32
    %129 = vector.broadcast %cst_38 : f32 to vector<8x1xf32>
    %130 = arith.divf %128, %129 : vector<8x1xf32>
    %cst_39 = arith.constant 9.99999974E-6 : f32
    %131 = vector.broadcast %cst_39 : f32 to vector<8x1xf32>
    %132 = arith.addf %130, %131 : vector<8x1xf32>
    %133 = math.rsqrt %132 : vector<8x1xf32>
    %134 = vector.broadcast %133 : vector<8x1xf32> to vector<8x32xf32>
    %135 = arith.mulf %125, %134 : vector<8x32xf32>
    %c0_40 = arith.constant 0 : index
    %c0_41 = arith.constant 0 : index
    %136 = vector.load %arg6[%c0_40, %c0_41] : memref<1x32xf32, #tpu.memory_space<vmem>>, vector<1x32xf32>
    %137 = vector.broadcast %136 : vector<1x32xf32> to vector<8x32xf32>
    %138 = arith.mulf %135, %137 : vector<8x32xf32>
    %c0_42 = arith.constant 0 : index
    %c0_43 = arith.constant 0 : index
    %139 = vector.load %arg7[%c0_42, %c0_43] : memref<1x32xf32, #tpu.memory_space<vmem>>, vector<1x32xf32>
    %140 = vector.broadcast %139 : vector<1x32xf32> to vector<8x32xf32>
    %141 = arith.addf %138, %140 : vector<8x32xf32>
    %142 = arith.truncf %141 : vector<8x32xf32> to vector<8x32xbf16>
    %cst_44 = arith.constant 0.000000e+00 : f32
    %143 = vector.broadcast %cst_44 : f32 to vector<8x32xf32>
    %c0_45 = arith.constant 0 : index
    %c0_46 = arith.constant 0 : index
    %144 = vector.load %arg8[%c0_45, %c0_46] : memref<32x64xbf16, #tpu.memory_space<vmem>>, vector<32x64xbf16>
    %cst_47 = arith.constant dense<0.000000e+00> : vector<8x64xf32>
    %145 = tpu.matmul %142, %144, %cst_47 {dimension_numbers = #tpu.dot_dimension_numbers<[1], [0], [0], [1], [0, 0, 1, 1], [], []>} : vector<8x32xbf16>, vector<32x64xbf16>, vector<8x64xf32> -> vector<8x64xf32>
    %c0_48 = arith.constant 0 : index
    %c0_49 = arith.constant 0 : index
    %146 = vector.load %arg9[%c0_48, %c0_49] : memref<1x64xf32, #tpu.memory_space<vmem>>, vector<1x64xf32>
    %147 = vector.broadcast %146 : vector<1x64xf32> to vector<8x64xf32>
    %148 = arith.addf %145, %147 : vector<8x64xf32>
    %cst_50 = arith.constant 5.000000e-01 : f32
    %149 = vector.broadcast %cst_50 : f32 to vector<8x64xf32>
    %150 = arith.mulf %149, %148 : vector<8x64xf32>
    %cst_51 = arith.constant 0.707106769 : f32
    %151 = vector.broadcast %cst_51 : f32 to vector<8x64xf32>
    %152 = arith.mulf %148, %151 : vector<8x64xf32>
    %153 = math.erf %152 : vector<8x64xf32>
    %cst_52 = arith.constant 1.000000e+00 : f32
    %154 = vector.broadcast %cst_52 : f32 to vector<8x64xf32>
    %155 = arith.addf %154, %153 : vector<8x64xf32>
    %156 = arith.mulf %150, %155 : vector<8x64xf32>
    %157 = arith.truncf %156 : vector<8x64xf32> to vector<8x64xbf16>
    %c0_53 = arith.constant 0 : index
    %c0_54 = arith.constant 0 : index
    %158 = vector.load %arg10[%c0_53, %c0_54] : memref<64x32xbf16, #tpu.memory_space<vmem>>, vector<64x32xbf16>
    %cst_55 = arith.constant dense<0.000000e+00> : vector<8x32xf32>
    %159 = tpu.matmul %157, %158, %cst_55 {dimension_numbers = #tpu.dot_dimension_numbers<[1], [0], [0], [1], [0, 0, 1, 1], [], []>} : vector<8x64xbf16>, vector<64x32xbf16>, vector<8x32xf32> -> vector<8x32xf32>
    %160 = arith.addf %143, %159 : vector<8x32xf32>
    %c0_56 = arith.constant 0 : index
    %c0_57 = arith.constant 0 : index
    %161 = vector.load %arg11[%c0_56, %c0_57] : memref<1x32xf32, #tpu.memory_space<vmem>>, vector<1x32xf32>
    %162 = vector.broadcast %161 : vector<1x32xf32> to vector<8x32xf32>
    %163 = arith.addf %160, %162 : vector<8x32xf32>
    %164 = vector.shape_cast %163 : vector<8x32xf32> to vector<1x8x32xf32>
    %c0_58 = arith.constant 0 : index
    %c0_59 = arith.constant 0 : index
    %c0_60 = arith.constant 0 : index
    %165 = vector.load %arg12[%c0_58, %c0_59, %c0_60] : memref<1x8x32xf32, #tpu.memory_space<vmem>>, vector<1x8x32xf32>
    tpu.vector_store %arg12[%c0_58, %c0_59, %c0_60], %164 {strides = array<i32>} : memref<1x8x32xf32, #tpu.memory_space<vmem>>, vector<1x8x32xf32>,
    return
  }
  func.func @transform_0(%arg0: i32) -> (i32, i32, i32) {
    %c0_i32 = arith.constant 0 : i32
    %c0_i32_0 = arith.constant 0 : i32
    %c0_i32_1 = arith.constant 0 : i32
    return %arg0, %c0_i32, %c0_i32_0 : i32, i32, i32
  }
  func.func @transform_1(%arg0: i32) -> (i32, i32) {
    %c0_i32 = arith.constant 0 : i32
    %c0_i32_0 = arith.constant 0 : i32
    %c0_i32_1 = arith.constant 0 : i32
    return %c0_i32, %c0_i32_0 : i32, i32
  }
  func.func @transform_2(%arg0: i32) -> (i32, i32) {
    %c0_i32 = arith.constant 0 : i32
    %c0_i32_0 = arith.constant 0 : i32
    %c0_i32_1 = arith.constant 0 : i32
    return %c0_i32, %c0_i32_0 : i32, i32
  }
  func.func @transform_3(%arg0: i32) -> (i32, i32) {
    %c0_i32 = arith.constant 0 : i32
    %c0_i32_0 = arith.constant 0 : i32
    %c0_i32_1 = arith.constant 0 : i32
    return %c0_i32, %c0_i32_0 : i32, i32
  }
  func.func @transform_4(%arg0: i32) -> (i32, i32) {
    %c0_i32 = arith.constant 0 : i32
    %c0_i32_0 = arith.constant 0 : i32
    %c0_i32_1 = arith.constant 0 : i32
    return %c0_i32, %c0_i32_0 : i32, i32
  }
  func.func @transform_5(%arg0: i32) -> (i32, i32) {
    %c0_i32 = arith.constant 0 : i32
    %c0_i32_0 = arith.constant 0 : i32
    %c0_i32_1 = arith.constant 0 : i32
    return %c0_i32, %c0_i32_0 : i32, i32
  }
  func.func @transform_6(%arg0: i32) -> (i32, i32) {
    %c0_i32 = arith.constant 0 : i32
    %c0_i32_0 = arith.constant 0 : i32
    %c0_i32_1 = arith.constant 0 : i32
    return %c0_i32, %c0_i32_0 : i32, i32
  }
  func.func @transform_7(%arg0: i32) -> (i32, i32) {
    %c0_i32 = arith.constant 0 : i32
    %c0_i32_0 = arith.constant 0 : i32
    %c0_i32_1 = arith.constant 0 : i32
    return %c0_i32, %c0_i32_0 : i32, i32
  }
  func.func @transform_8(%arg0: i32) -> (i32, i32) {
    %c0_i32 = arith.constant 0 : i32
    %c0_i32_0 = arith.constant 0 : i32
    %c0_i32_1 = arith.constant 0 : i32
    return %c0_i32, %c0_i32_0 : i32, i32
  }
  func.func @transform_9(%arg0: i32) -> (i32, i32) {
    %c0_i32 = arith.constant 0 : i32
    %c0_i32_0 = arith.constant 0 : i32
    %c0_i32_1 = arith.constant 0 : i32
    return %c0_i32, %c0_i32_0 : i32, i32
  }
  func.func @transform_10(%arg0: i32) -> (i32, i32) {
    %c0_i32 = arith.constant 0 : i32
    %c0_i32_0 = arith.constant 0 : i32
    %c0_i32_1 = arith.constant 0 : i32
    return %c0_i32, %c0_i32_0 : i32, i32
  }
  func.func @transform_11(%arg0: i32) -> (i32, i32, i32) {
    %c0_i32 = arith.constant 0 : i32
    %c0_i32_0 = arith.constant 0 : i32
    %c0_i32_1 = arith.constant 0 : i32
    return %arg0, %c0_i32, %c0_i32_0 : i32, i32, i32
  }
}

</mosaic_0001>

<bundles_post_ra>
// kernel: tpu_custom_call.1
= control target key start
LH: loop header
LB: loop body
LE: loop exit
PB: predicated region body
PF: predicated region fallthrough
CT: control target
= control target key end

     0   :  { %s2374_s0 = inlined_call_operand.hbm [shape: bf16[2,8,32], index: 0, kind: input, shape index: {}]   ;;  %s2375_s1 = inlined_call_operand.vmem [shape: bf16[32,96], index: 1, kind: input, shape index: {}]   ;;  %s2376_s2 = inlined_call_operand.hbm [shape: f32[1,96], index: 2, kind: input, shape index: {}]   ;;  %s2377_s3 = inlined_call_operand.vmem [shape: bf16[32,32], index: 3, kind: input, shape index: {}]   ;;  %s2378_s4 = inlined_call_operand.hbm [shape: f32[1,32], index: 4, kind: input, shape index: {}]   ;;  %s2379_s5 = inlined_call_operand.hbm [shape: f32[1,32], index: 5, kind: input, shape index: {}]   ;;  %s2380_s6 = inlined_call_operand.hbm [shape: f32[1,32], index: 6, kind: input, shape index: {}]   ;;  %s2381_s7 = inlined_call_operand.vmem [shape: bf16[32,64], index: 7, kind: input, shape index: {}]   ;;  %s2382_s8 = inlined_call_operand.hbm [shape: f32[1,64], index: 8, kind: input, shape index: {}]   ;;  %s2383_s9 = inlined_call_operand.vmem [shape: bf16[64,32], index: 9, kind: input, shape index: {}]   ;;  %s2384_s10 = inlined_call_operand.vmem [shape: f32[1,32], index: 10, kind: input, shape index: {}]   ;;  %s2385_s11 = inlined_call_operand.hbm [shape: f32[2,8,32], index: 11, kind: output, shape index: {}]  }
   0x1   :  { %2390 = sst [smem:[#allocation21_spill]] %s2376_s2 }
   0x2   :  { %2391 = sst [smem:[#allocation22_spill]] %s2378_s4 }
   0x3   :  { %2392 = sst [smem:[#allocation23_spill]] %s2379_s5 }
   0x4   :  { %2393 = sst [smem:[#allocation24_spill]] %s2380_s6 }
   0x5   :  { %2394 = sst [smem:[#allocation25_spill]] %s2382_s8 }
   0x6   :  { %16 = vsyncpa [#allocation4], 0 }
   0x7   :  { %18 = vsyncpa [#allocation4 + $0x1], 0 }
   0x8   :  { %19 = vsyncpa [#allocation7], 0 }
   0x9   :  { %20 = vsyncpa [#allocation10], 0 }
   0xa   :  { %21 = vsyncpa [#allocation13], 0 }
   0xb   :  { %22 = vsyncpa [#allocation5], 0 }
   0xc   :  { %24 = vsyncpa [#allocation5 + $0x1], 0  ;;  %s2029_s17 = smov 0   ;;  %s2031_s18 = smov 0  }
   0xd   :  { %s2033_s19 = smov 0   ;;  %s2035_s20 = smov 0  }
   0xe LB: > { %s1946_s21 = smov [#allocation6]   ;;  %s2050_s23 = sadd.s32 4294967295, %s1944_s20   ;;  %s1944_s20 = sphi %s2035_s20, %s2424_s20   ;;  %s1940_s19 = sphi %s2033_s19, %s2423_s19   ;;  %s1936_s18 = sphi %s2031_s18, %s2422_s18   ;;  %s1932_s17 = sphi %s2029_s17, %s2421_s17  }
   0xf   : > { %s313_s22 = sshll.u32 %s1946_s21, 4  ;;  %p1398_p0 = scmp.ge.s32.totalorder %s1944_s20, 1  ;;  %s314_s22 = int_to_ptr.vmem [resolvable:$true] %s313_s22 }
  0x10   : > { %p2386_p1 = scmp.eq.s32.totalorder %s2050_s23, 0  ;;  %p297_p2 = scmp.lt.s32.totalorder %s1944_s20, 3 }
  0x11   : > { %s1947_s25 = smov [#allocation9]   ;;  %s1948_s27 = smov [#allocation8]  }
  0x12   : > { %p2055_p3 = pnand %p1398_p0, %p297_p2  ;;  %s338_s26 = sshll.u32 %s1947_s25, 4  ;;  %s2062_s26 = int_to_ptr.vmem [resolvable:$true] %s338_s26 }
  0x13   : > { %s327_s28 = sshll.u32 %s1948_s27, 4  ;;  %s1949_s30 = smov [#allocation11]   ;;  %s2070_s28 = int_to_ptr.vmem [resolvable:$true] %s327_s28 }
  0x14   : > { %s2395_s24 = scalar_select %p2055_p3, 1, 0 }
  0x15   : > { %p1591_p5 = pneg %p2055_p3  ;;  %s2072_s12 = sshll.u32 %s1949_s30, 4  ;;  %s350_s12 = int_to_ptr.vmem [resolvable:$true] %s2072_s12 }
  0x16   : > { %s1721_s14 = scalar_lea.vmem %s314_s22, 16  ;;  %s1728_s15 = scalar_lea.vmem %s314_s22, 32 }
  0x17   : > { %p2066_p6 = pnand %p1591_p5, %p2386_p1  ;;  %p1722_p8 = scmp.ne.s32.totalorder %s314_s22, %s1721_s14 }
  0x18   : > { %p1729_p11 = scmp.lt.s32.totalorder %s314_s22, %s314_s22  ;;  %p1730_p12 = scmp.lt.s32.totalorder %s1728_s15, %s1721_s14 }
  0x19   : > { %p2076_p7 = pneg %p2066_p6 }
  0x1a   : > { %p1731_p13 = por %p1730_p12, %p1729_p11 }
  0x1b   : > { %p1724_p9 = pnand %p1722_p8, %p2076_p7 }
  0x1d   : > { %p1725_p10 = pneg %p1724_p9 }
  0x1f   : > { %p1732_p0 = pnand %p1731_p13, %p1725_p10 }
  0x21   : > { %1735 = shalt.err (!%p1732_p0)
}
  0x22   : > { %s2398_s2 = sld [smem:[#allocation21_spill]]  ;;  %s1747_s25 = scalar_lea.vmem %s2062_s26, 16 }
  0x23   : > { %p1748_p2 = scmp.ne.s32.totalorder %s2062_s26, %s1747_s25  ;;  %s1754_s27 = scalar_lea.vmem %s2062_s26, 32 }
  0x24   : > { %p1755_p9 = scmp.lt.s32.totalorder %s2062_s26, %s2062_s26  ;;  %p1756_p10 = scmp.lt.s32.totalorder %s1754_s27, %s1747_s25 }
  0x25   : > { %p1750_p5 = pnand %p1748_p2, %p2076_p7 }
  0x26   : > { %p1757_p11 = por %p1756_p10, %p1755_p9 }
  0x27   : > { %p1751_p8 = pneg %p1750_p5 }
  0x28   : > { %1594 = dma.hbm_to_vmem [thread:$0]  (!%p2066_p6), %s2398_s2, 16, %s314_s22, [#allocation7]  }
  0x29   : > { %p1758_p12 = pnand %p1757_p11, %p1751_p8 }
  0x2b   : > { %1761 = shalt.err (!%p1758_p12)
}
  0x2c   : > { %s2399_s5 = sld [smem:[#allocation23_spill]]  ;;  %s1773_s22 = scalar_lea.vmem %s2070_s28, 16 }
  0x2d   : > { %p1774_p13 = scmp.ne.s32.totalorder %s2070_s28, %s1773_s22  ;;  %s1780_s15 = scalar_lea.vmem %s2070_s28, 32 }
  0x2e   : > { %p1781_p5 = scmp.lt.s32.totalorder %s2070_s28, %s2070_s28  ;;  %p1782_p8 = scmp.lt.s32.totalorder %s1780_s15, %s1773_s22 }
  0x2f   : > { %p1776_p0 = pnand %p1774_p13, %p2076_p7 }
  0x30   : > { %p1783_p9 = por %p1782_p8, %p1781_p5 }
  0x31   : > { %p1777_p2 = pneg %p1776_p0 }
  0x32   : > { %1600 = dma.hbm_to_vmem [thread:$0]  (!%p2066_p6), %s2399_s5, 16, %s2062_s26, [#allocation10]  }
  0x33   : > { %p1784_p10 = pnand %p1783_p9, %p1777_p2 }
  0x35   : > { %1787 = shalt.err (!%p1784_p10)
}
  0x36   : > { %s2400_s4 = sld [smem:[#allocation22_spill]]  ;;  %s1950_s26 = smov [#allocation12]  }
  0x37   : > { %s363_s25 = sshll.u32 %s1950_s26, 4  ;;  %s1799_s27 = scalar_lea.vmem %s350_s12, 16  ;;  %s364_s25 = int_to_ptr.vmem [resolvable:$true] %s363_s25 }
  0x38   : > { %p1800_p11 = scmp.ne.s32.totalorder %s350_s12, %s1799_s27  ;;  %s1806_s30 = scalar_lea.vmem %s350_s12, 32 }
  0x39   : > { %p1807_p0 = scmp.lt.s32.totalorder %s350_s12, %s350_s12  ;;  %p1808_p2 = scmp.lt.s32.totalorder %s1806_s30, %s1799_s27 }
  0x3a   : > { %p1802_p12 = pnand %p1800_p11, %p2076_p7 }
  0x3b   : > { %p1809_p5 = por %p1808_p2, %p1807_p0 }
  0x3c   : > { %1597 = dma.hbm_to_vmem [thread:$0]  (!%p2066_p6), %s2400_s4, 16, %s2070_s28, [#allocation7]  }
  0x3d   : > { %p1803_p13 = pneg %p1802_p12 }
  0x3f   : > { %p1810_p8 = pnand %p1809_p5, %p1803_p13 }
  0x41   : > { %1813 = shalt.err (!%p1810_p8)
}
  0x42   : > { %s2401_s6 = sld [smem:[#allocation24_spill]]  ;;  %s1825_s28 = scalar_lea.vmem %s364_s25, 16 }
  0x43   : > { %p1826_p9 = scmp.ne.s32.totalorder %s364_s25, %s1825_s28  ;;  %s1832_s15 = scalar_lea.vmem %s364_s25, 32 }
  0x44   : > { %p1833_p12 = scmp.lt.s32.totalorder %s364_s25, %s364_s25  ;;  %p1834_p4 = scmp.lt.s32.totalorder %s1832_s15, %s1825_s28 }
  0x45   : > { %p1828_p10 = pnand %p1826_p9, %p2076_p7 }
  0x46   : > { %p1835_p1 = por %p1834_p4, %p1833_p12 }
  0x47   : > { %p1829_p11 = pneg %p1828_p10 }
  0x48   : > { %1603 = dma.hbm_to_vmem [thread:$0]  (!%p2066_p6), %s2401_s6, 16, %s350_s12, [#allocation10]  }
  0x49   : > { %p1836_p0 = pnand %p1835_p1, %p1829_p11 }
  0x4b   : > { %1839 = shalt.err (!%p1836_p0)
}
  0x4c   : > { %s2402_s8 = sld [smem:[#allocation25_spill]]  ;;  %s1397_s12 = sadd.s32 4294967294, %s1944_s20  }
  0x4d   : > { %s2130_s29 = sadd.s32 1, %s1944_s20   ;;  %s37_s13 = sadd.s32 1, %s1940_s19 }
  0x4e   : > { %s34_s26 = ssub.s32 %s1944_s20, %s2130_s29  ;;  %p44_p1 = scmp.ne.s32.totalorder %s1940_s19, %s1936_s18 }
  0x4f   : > { %p35_p4 = scmp.eq.s32.totalorder %s34_s26, 0  ;;  %p45_p7 = scmp.eq.s32.totalorder %s1944_s20, 0 }
  0x50   : > { %p50_p13 = scmp.ne.s32.totalorder %s1936_s18, %s1932_s17  ;;  %p284_p2 = scmp.eq.s32.totalorder %s2050_s23, 1 }
  0x51   : > { %s2142_s27 = scalar_select %p35_p4, %s1940_s19, %s37_s13  }
  0x52   : > { %1606 = dma.hbm_to_vmem [thread:$0]  (!%p2066_p6), %s2402_s8, 16, %s364_s25, [#allocation13]  }
  0x53   : > { %2403 = sst [smem:[#allocation20_spill]] %s2142_s27  ;;  %p46_p5 = por %p45_p7, %p44_p1 }
  0x54   : > { %p2404_p8 = scmp.eq.s32.totalorder %s2050_s23, 0  ;;  %p2150_p6 = por %p284_p2, %p44_p1 }
  0x55   : > { %p290_p10 = scmp.eq.s32.totalorder %s1397_s12, 1  ;;  %p1620_p11 = scmp.lt.s32.totalorder %s1944_s20, 2 }
  0x56   : > { %p2146_p9 = por %p2404_p8, %p50_p13  ;;  %s380_s14 = sand.u32 1, %s1940_s19  }
  0x57   : > { %s2406_s25 = scalar_select %p2150_p6, 1, 0 }
  0x58   : > { %s2405_s30 = scalar_select %p2146_p9, 1, 0 }
  0x59   : > { %p2156_p12 = por %p290_p10, %p50_p13  ;;  %s1405_s28 = sshll.u32 %s380_s14, 2 }
  0x5a   : > { %s1406_s15 = sshll.u32 %s1944_s20, 6  ;;  %s384_s26 = scalar_lea.vmem [#allocation3], %s1405_s28 }
  0x5b   : > { %s2407_s22 = scalar_select %p2156_p12, 1, 0 }
  0x5c   : > { %s2164_s13 = scalar_lea.hbm %s2374_s0, %s1406_s15  ;;  %s391_s2 = sshll.u32 %s384_s26, 4  ;;  %s392_s2 = int_to_ptr.vmem [resolvable:$true] %s391_s2 }
  0x5d   : > { %p2166_p0 = pnand %p1620_p11, %p46_p5  ;;  %s381_s4 = scalar_lea.sflag [#allocation4], %s380_s14 }
  0x5e   : > { %s1840_s5 = scalar_lea.hbm %s2164_s13, 64  ;;  %s1845_s21 = scalar_lea.hbm %s2374_s0, 128 }
  0x5f   : > { %p1841_p1 = scmp.ne.s32.totalorder %s2164_s13, %s1840_s5  ;;  %p1842_p4 = pneg %p2166_p0 }
  0x60   : > { %p1846_p2 = scmp.lt.s32.totalorder %s2164_s13, %s2374_s0  ;;  %p1847_p5 = scmp.lt.s32.totalorder %s1845_s21, %s1840_s5 }
  0x61   : > { %p1843_p7 = pnand %p1842_p4, %p1841_p1 }
  0x62   : > { %p1848_p8 = por %p1847_p5, %p1846_p2 }
  0x63   : > { %p1844_p13 = pneg %p1843_p7 }
  0x65   : > { %p1849_p10 = pnand %p1848_p8, %p1844_p13 }
  0x67   : > { %1852 = shalt.err (!%p1849_p10)
}
  0x68   : > { %s1853_s26 = scalar_lea.vmem %s392_s2, 64  ;;  %s1951_s14 = smov [#allocation3]  }
  0x69   : > { %p1854_p11 = scmp.ne.s32.totalorder %s392_s2, %s1853_s26  ;;  %s1858_s8 = sshll.u32 %s1951_s14, 4  ;;  %s1859_s8 = int_to_ptr.vmem [resolvable:$false] %s1858_s8 }
  0x6a   : > { %s1860_s27 = scalar_lea.vmem %s1859_s8, 128  ;;  %p1861_p1 = scmp.lt.s32.totalorder %s392_s2, %s1859_s8 }
  0x6b   : > { %p1856_p12 = pnand %p1854_p11, %p1842_p4  ;;  %p1862_p7 = scmp.lt.s32.totalorder %s1860_s27, %s1853_s26 }
  0x6d   : > { %p1857_p6 = pneg %p1856_p12  ;;  %p1863_p9 = por %p1862_p7, %p1861_p1 }
  0x6f   : > { %p1864_p3 = pnand %p1863_p9, %p1857_p6 }
  0x71   : > { %1867 = shalt.err (!%p1864_p3)
}
  0x72   : > { %1610 = dma.hbm_to_vmem [thread:$0]  (!%p2166_p0), %s2164_s13, 64, %s392_s2, %s381_s4  }
  0x73   : > { %p2409_p13 = scmp.ne.s32.totalorder %s2395_s24, 0 }
  0x74   : > { %s2187_s5 = sand.u32 (!%p2409_p13), 1, %s1936_s18   ;;  %p2410_p12 = scmp.ne.s32.totalorder (!%p2409_p13), %s2405_s30, 0 }
  0x75   : > { %400 = sbr.rel (%p2409_p13) target bundleno = 2282 (0x8ea), region = 64  ;;  %s1408_s6 = sshll.u32 (!%p2409_p13), %s2187_s5, 2 }
  0x76   : > { %s403_s15 = scalar_lea.sflag (!%p2409_p13), [#allocation4], %s2187_s5  ;;  %s406_s8 = scalar_lea.vmem (!%p2409_p13), [#allocation3], %s1408_s6 }
  0x7a   : > { %1911 = dma.done.wait (%p2410_p12), %s403_s15, 64  }
  0x7b   : > { %1913 = vsyncadd (%p2410_p12), %s403_s15, 4294967232  ;;  %p2411_p3 = scmp.eq.s32.totalorder %s2050_s23, 0 }
  0x7d   : > { %1915 = dma.done.wait (%p2411_p3), [#allocation7], 32   ;;  %p2412_p9 = pmov %p2411_p3 }
  0x7e   : > { %p2413_p6 = pmov %p2411_p3 }
  0x7f   : > { %1917 = vsyncadd (%p2412_p9), [#allocation7], 4294967264 }
  0x80   : > { %1919 = dma.done.wait (%p2413_p6), [#allocation10], 32   ;;  %p2414_p0 = pmov %p2411_p3 }
  0x82   : > { %1921 = vsyncadd (%p2414_p0), [#allocation10], 4294967264  ;;  %p2415_p4 = pmov %p2414_p0 }
  0x83   : > { %p2416_p2 = pmov %p2414_p0 }
  0x84   : > { %1923 = dma.done.wait (%p2415_p4), [#allocation13], 16  }
  0x85   : > { %1925 = vsyncadd (%p2416_p2), [#allocation13], 4294967280  ;;  %v1952_v0 = vmov 0.0   ;;  %vm1953_vm0 = vmmov 0   ;;  %v1680_v1 = vld [vmem:[%s2375_s1 + $0x8] sm:$0xff]   ;;  %v1681_v2 = vld [vmem:[%s2375_s1] sm:$0xff]  }
  0x86   : > { %1483 = vmatprep.subr.bf16.mxu0 %v1952_v0  ;;  %1487 = vmatprep.mubr.msk.bf16.mxu0 %vm1953_vm0, %v1952_v0  ;;  %vm491_vm1 = vcmask 261120   ;;  %v2220_v3 = vld [vmem:[%s406_s8] sm:$0xf]  ;;  %v1415_v4 = vld [vmem:[#allocation6] ss:$0 sm:$0xff]  ;;  %s1954_s30 = smov 96  }
  0x87   : > { %1491 = vmatprep.subr.bf16.mxu1 %v1952_v0  ;;  %1493 = vmatprep.mubr.msk.bf16.mxu1 %vm1953_vm0, %v1952_v0  ;;  %s1955_s13 = smov 120   ;;  %s1956_s12 = smov 88   ;;  %vm541_vm2 = vcmask 64512   ;;  %vm605_vm3 = vcmask 1043456   ;;  %vm650_vm4 = vcmask 60416   ;;  %vm770_vm5 = vcmask 126016  }
  0x88   : > { %1484 = vmatpush3.bf16.msra.mxu0 %v1680_v1  ;;  %s1957_s16 = smov 80   ;;  %s1958_s21 = smov 112   ;;  %vm889_vm6 = vcmask 191616   ;;  %vm1008_vm7 = vcmask 257216   ;;  %vm1220_vm8 = vcmask 523264  }
  0x89   : > { %1485 = vmatprep.subr.bf16.mxu0 %v1952_v0  ;;  %s1959_s28 = smov 72   ;;  %s1960_s26 = smov 104  }
  0x8a   : > { %s1961_s14 = smov 56   ;;  %s1962_s6 = smov 64  }
  0x8b   : > { %s1963_s15 = smov 40   ;;  %s1964_s8 = smov 48  }
  0x8c   : > { %1486 = vmatpush3.bf16.msra.mxu0 %v1681_v2  ;;  %s1965_s2 = smov 8   ;;  %p2417_p8 = scmp.ne.s32.totalorder %s2406_s25, 0 }
  0x8d   : > { %1497 = vmatprep.subr.bf16.mxu0 %v1952_v0 }
  0x8f   : > { %1488 = vmatmul.mubr.msk.bf16.vlgmr.msra.gmra.mxu0 %vm491_vm1, %v2220_v3 }
  0x90   : > { %1499 = vmatprep.mubr.msk.bf16.mxu0 %vm1953_vm0, %v1952_v0 }
 0x14f   : > { %v529_v5 = vpop.f32.mrf.mxu0 }
 0x150   : > { %v530_v6 = vadd.f32 %v1415_v4, %v529_v5 }
 0x151   : > { %v1489_v7 = vpop.f32.mrf.mxu0 }
 0x152   : > { %v535_v8 = vmul.f32 0.35355338, %v530_v6  ;;  %v2227_v9 = vpack.c.bf16 %v530_v6, %v530_v6 }
 0x153   : > { %v532_v10 = vpop.f32.mrf.mxu0 }
 0x154   : > { %v536_v11 = vpack.c.bf16 %v535_v8, %v535_v8  ;;  %539 = vrot.lane.b32.xlu0 %v2227_v9, %s1954_s30  ;;  %s1414_s30 = sshll.u32 %s2187_s5, 3 }
 0x155   : > { %v1490_v12 = vpop.f32.mrf.mxu0 }
 0x156   : > { %653 = vrot.lane.b32.xlu1 %v536_v11, %s1955_s13  ;;  %s1966_s13 = smov 16  }
 0x158   : > { %655 = vrot.lane.b32.xlu0 %v2227_v9, %s1956_s12  ;;  %s1967_s12 = smov 24  }
 0x15a   : > { %774 = vrot.lane.b32.xlu1 %v2227_v9, %s1957_s16  ;;  %s1447_s16 = sshll.u32 %s2050_s23, 7 }
 0x15c   : > { %772 = vrot.lane.b32.xlu0 %v536_v11, %s1958_s21  ;;  %s464_s21 = scalar_lea.vmem [#allocation14], %s1414_s30 }
 0x15e   : > { %893 = vrot.lane.b32.xlu1 %v2227_v9, %s1959_s28  ;;  %s1279_s28 = sshll.u32 %s464_s21, 4  ;;  %s2332_s28 = int_to_ptr.vmem [resolvable:$true] %s1279_s28 }
 0x15f   : > { %s1868_s23 = scalar_lea.vmem %s2332_s28, 128 }
 0x160   : > { %891 = vrot.lane.b32.xlu0 %v536_v11, %s1960_s26  ;;  %p1869_p5 = scmp.ne.s32.totalorder %s2332_s28, %s1868_s23 }
 0x162   : > { %p1870_p10 = pnand %p1869_p5, %p2417_p8 }
 0x164   : > { %p1871_p11 = pneg %p1870_p10 }
 0x1c6   : > { %v540_v13 = vpop.permute.xlu0 %539 }
 0x1c7   : > { %v546_v14 = vsel %vm541_vm2, %v540_v13, 0 }
 0x1c8   : > { %1492 = vmatpush3.bf16.xpose.msra.mxu1 %v546_v14  ;;  %v654_v16 = vpop.permute.xlu1 %653 }
 0x1c9   : > { %1503 = vmatprep.subr.bf16.mxu1 %v1952_v0 }
 0x1ca   : > { %v656_v15 = vpop.permute.xlu0 %655 }
 0x1cb   : > { %v661_v17 = vsel %vm541_vm2, %v656_v15, 0 }
 0x1cc   : > { %v775_v18 = vpop.permute.xlu1 %774 }
 0x1cd   : > { %v780_v19 = vsel %vm541_vm2, %v775_v18, 0 }
 0x1ce   : > { %v773_v21 = vpop.permute.xlu0 %772 }
 0x1cf   : > { %1494 = vmatmul.mubr.msk.bf16.vlgmr.msra.gmra.mxu1 %vm541_vm2, %v536_v11 }
 0x1d0   : > { %1504 = vmatpush3.bf16.xpose.msra.mxu1 %v661_v17  ;;  %1505 = vmatprep.mubr.msk.bf16.mxu1 %vm1953_vm0, %v1952_v0  ;;  %v894_v20 = vpop.permute.xlu1 %893 }
 0x1d1   : > { %1515 = vmatprep.subr.bf16.mxu1 %v1952_v0  ;;  %v899_v22 = vsel %vm541_vm2, %v894_v20, 0 }
 0x1d2   : > { %v892_v23 = vpop.permute.xlu0 %891 }
 0x1d7   : > { %1506 = vmatmul.mubr.msk.bf16.vlgmr.msra.gmra.mxu1 %vm541_vm2, %v654_v16 }
 0x1d8   : > { %1516 = vmatpush3.bf16.xpose.msra.mxu1 %v780_v19  ;;  %1517 = vmatprep.mubr.msk.bf16.mxu1 %vm1953_vm0, %v1952_v0 }
 0x1d9   : > { %1527 = vmatprep.subr.bf16.mxu1 %v1952_v0 }
 0x1df   : > { %1518 = vmatmul.mubr.msk.bf16.vlgmr.msra.gmra.mxu1 %vm541_vm2, %v773_v21 }
 0x1e0   : > { %1528 = vmatpush3.bf16.xpose.msra.mxu1 %v899_v22  ;;  %1529 = vmatprep.mubr.msk.bf16.mxu1 %vm1953_vm0, %v1952_v0 }
 0x1e1   : > { %1539 = vmatprep.subr.bf16.mxu1 %v1952_v0 }
 0x1e7   : > { %1530 = vmatmul.mubr.msk.bf16.vlgmr.msra.gmra.mxu1 %vm541_vm2, %v892_v23 }
 0x1e8   : > { %1543 = vmatprep.mubr.msk.bf16.mxu1 %vm1953_vm0, %v1952_v0 }
 0x28f   : > { %v582_v24 = vpop.f32.mrf.mxu1 }
 0x290   : > { %v588_v25 = vsel %vm541_vm2, %v582_v24, -inf }
 0x291   : > { %589 = vmax.xlane.f32.xlu1 %v588_v25  ;;  %v1495_v26 = vpop.f32.mrf.mxu1 }
 0x293   : > { %v585_v27 = vpop.f32.mrf.mxu1 }
 0x295   : > { %v1496_v28 = vpop.f32.mrf.mxu1 }
 0x297   : > { %v697_v29 = vpop.f32.mrf.mxu1 }
 0x298   : > { %v703_v30 = vsel %vm541_vm2, %v697_v29, -inf }
 0x299   : > { %704 = vmax.xlane.f32.xlu0 %v703_v30  ;;  %v1507_v31 = vpop.f32.mrf.mxu1 }
 0x29b   : > { %v700_v32 = vpop.f32.mrf.mxu1 }
 0x29d   : > { %v1508_v33 = vpop.f32.mrf.mxu1 }
 0x29f   : > { %v816_v34 = vpop.f32.mrf.mxu1 }
 0x2a0   : > { %v822_v35 = vsel %vm541_vm2, %v816_v34, -inf }
 0x2a1   : > { %823 = vmax.xlane.f32.xlu0 %v822_v35  ;;  %v1519_v36 = vpop.f32.mrf.mxu1 }
 0x2a2   : > { %v1682_v36 = vld [vmem:[%s2377_s3 + $0x8] sm:$0xff]  }
 0x2a3   : > { %v819_v37 = vpop.f32.mrf.mxu1  ;;  %1540 = vmatpush3.bf16.msra.mxu1 %v1682_v36 }
 0x2a4   : > { %1541 = vmatprep.subr.bf16.mxu1 %v1952_v0 }
 0x2a5   : > { %v1520_v38 = vpop.f32.mrf.mxu1 }
 0x2a7   : > { %v935_v39 = vpop.f32.mrf.mxu1 }
 0x2a8   : > { %v941_v40 = vsel %vm541_vm2, %v935_v39, -inf }
 0x2a9   : > { %942 = vmax.xlane.f32.xlu1 %v941_v40  ;;  %v1531_v41 = vpop.f32.mrf.mxu1 }
 0x2ab   : > { %v938_v42 = vpop.f32.mrf.mxu1 }
 0x2ad   : > { %v1532_v43 = vpop.f32.mrf.mxu1 }
 0x31a   : > { %v590_v44 = vpop.xlane.xlu1 %589 }
 0x31b   : > { %v591_v45 = vsub.f32 %v582_v24, %v590_v44 }
 0x31d   : > { %v592_v46 = vmul.f32 1.442695, %v591_v45 }
 0x31f   : > { %1690 = vpow2.f32 %v592_v46 }
 0x322   : > { %v705_v47 = vpop.xlane.xlu0 %704 }
 0x323   : > { %v706_v48 = vsub.f32 %v697_v29, %v705_v47 }
 0x325   : > { %v707_v49 = vmul.f32 1.442695, %v706_v48 }
 0x327   : > { %1692 = vpow2.f32 %v707_v49 }
 0x32a   : > { %v824_v50 = vpop.xlane.xlu0 %823 }
 0x32b   : > { %v825_v51 = vsub.f32 %v816_v34, %v824_v50 }
 0x32c   : > { %v1691_v52 = vpop.eup %1690 }
 0x32d   : > { %v826_v53 = vmul.f32 1.442695, %v825_v51  ;;  %v594_v54 = vsel %vm541_vm2, %v1691_v52, 0.0 }
 0x32e   : > { %595 = vadd.xlane.f32.xlu0 %v594_v54 }
 0x32f   : > { %1694 = vpow2.f32 %v826_v53  ;;  %v467_v53 = vunpack.c.l.bf16 %v2220_v3  ;;  %v1684_v3 = vld [vmem:[%s2381_s7 + $0x8] sm:$0xff]  }
 0x332   : > { %v943_v59 = vpop.xlane.xlu1 %942 }
 0x333   : > { %v944_v60 = vsub.f32 %v935_v39, %v943_v59  ;;  %v1683_v39 = vld [vmem:[%s2377_s3] sm:$0xff]  }
 0x334   : > { %v1693_v55 = vpop.eup %1692  ;;  %1542 = vmatpush3.bf16.msra.mxu1 %v1683_v39 }
 0x335   : > { %v709_v56 = vsel %vm541_vm2, %v1693_v55, 0.0  ;;  %v945_v61 = vmul.f32 1.442695, %v944_v60  ;;  %1555 = vmatprep.subr.bf16.mxu1 %v1952_v0 }
 0x336   : > { %710 = vadd.xlane.f32.xlu1 %v709_v56 }
 0x337   : > { %1696 = vpow2.f32 %v945_v61 }
 0x33c   : > { %v1695_v57 = vpop.eup %1694 }
 0x33d   : > { %v828_v58 = vsel %vm541_vm2, %v1695_v57, 0.0 }
 0x33e   : > { %829 = vadd.xlane.f32.xlu0 %v828_v58 }
 0x344   : > { %v1697_v62 = vpop.eup %1696 }
 0x345   : > { %v947_v63 = vsel %vm541_vm2, %v1697_v62, 0.0 }
 0x347   : > { %715 = vrot.lane.b32.xlu1 %v2227_v9, %s1961_s14 }
 0x354   : > { %600 = vrot.lane.b32.xlu0 %v2227_v9, %s1962_s6  ;;  %s2330_s6 = scalar_lea.hbm %s2385_s11, %s1447_s16 }
 0x358   : > { %953 = vrot.lane.b32.xlu0 %v2227_v9, %s1963_s15  ;;  %s1266_s15 = scalar_lea.sflag [#allocation5], %s2187_s5 }
 0x36b   : > { %948 = vadd.xlane.f32.xlu1 %v947_v63 }
 0x37c   : > { %834 = vrot.lane.b32.xlu1 %v2227_v9, %s1964_s8  ;;  %s1968_s8 = smov [#allocation14]  }
 0x3b7   : > { %v596_v1 = vpop.xlane.xlu0 %595 }
 0x3b8   : > { %1698 = vrcp.f32 %v596_v1 }
 0x3bf   : > { %v711_v2 = vpop.xlane.xlu1 %710 }
 0x3c0   : > { %1700 = vrcp.f32 %v711_v2 }
 0x3c3   : > { %v716_v10 = vpop.permute.xlu1 %715 }
 0x3c4   : > { %v721_v13 = vsel %vm605_vm3, %v716_v10, 0  ;;  %v1434_v10 = vld [vmem:[#allocation9] ss:$0 sm:$0xff] }
 0x3c5   : > { %v1699_v4 = vpop.eup %1698 }
 0x3c6   : > { %v598_v6 = vmul.f32 %v1699_v4, %v1691_v52  ;;  %v1430_v52 = vld [vmem:[#allocation8] ss:$0 sm:$0xff]  ;;  %v1685_v4 = vld [vmem:[%s2381_s7] sm:$0xff]  }
 0x3c7   : > { %v830_v5 = vpop.xlane.xlu0 %829 }
 0x3c8   : > { %v599_v11 = vpack.c.bf16 %v598_v6, %v598_v6  ;;  %1702 = vrcp.f32 %v830_v5 }
 0x3cb   : > { %v601_v7 = vpop.permute.xlu0 %600 }
 0x3cc   : > { %v607_v8 = vsel %vm605_vm3, %v601_v7, 0 }
 0x3cd   : > { %1498 = vmatpush3.bf16.msra.mxu0 %v607_v8  ;;  %v1701_v12 = vpop.eup %1700 }
 0x3ce   : > { %1509 = vmatprep.subr.bf16.mxu0 %v1952_v0  ;;  %v713_v9 = vmul.f32 %v1701_v12, %v1693_v55  ;;  %v1435_v12 = vld [vmem:[#allocation11] ss:$0 sm:$0xff] }
 0x3cf   : > { %v954_v20 = vpop.permute.xlu0 %953 }
 0x3d0   : > { %1500 = vmatmul.mubr.msk.bf16.vlgmr.msra.gmra.mxu0 %vm541_vm2, %v599_v11  ;;  %v714_v14 = vpack.c.bf16 %v713_v9, %v713_v9  ;;  %v959_v22 = vsel %vm605_vm3, %v954_v20, 0 }
 0x3d1   : > { %1510 = vmatpush3.bf16.msra.mxu0 %v721_v13  ;;  %1511 = vmatprep.mubr.msk.bf16.mxu0 %vm1953_vm0, %v1952_v0 }
 0x3d2   : > { %1521 = vmatprep.subr.bf16.mxu0 %v1952_v0 }
 0x3d5   : > { %v1703_v15 = vpop.eup %1702 }
 0x3d6   : > { %v832_v17 = vmul.f32 %v1703_v15, %v1695_v57  ;;  %v1686_v15 = vld [vmem:[%s2383_s9 + $0x18] sm:$0xff]  }
 0x3d8   : > { %1512 = vmatmul.mubr.msk.bf16.vlgmr.msra.gmra.mxu0 %vm541_vm2, %v714_v14  ;;  %v833_v21 = vpack.c.bf16 %v832_v17, %v832_v17  ;;  %v1688_v17 = vld [vmem:[%s2383_s9 + $0x8] sm:$0xff]  }
 0x3d9   : > { %1523 = vmatprep.mubr.msk.bf16.mxu0 %vm1953_vm0, %v1952_v0 }
 0x3f4   : > { %v949_v16 = vpop.xlane.xlu1 %948 }
 0x3f5   : > { %1704 = vrcp.f32 %v949_v16  ;;  %v1687_v16 = vld [vmem:[%s2383_s9 + $0x10] sm:$0xff]  }
 0x3f8   : > { %v835_v18 = vpop.permute.xlu1 %834 }
 0x3f9   : > { %v840_v19 = vsel %vm605_vm3, %v835_v18, 0  ;;  %v1689_v18 = vld [vmem:[%s2383_s9] sm:$0xff]  }
 0x3fa   : > { %1522 = vmatpush3.bf16.msra.mxu0 %v840_v19  ;;  %v1436_v19 = vld [vmem:[#allocation12] ss:$0 sm:$0xff] }
 0x3fb   : > { %1533 = vmatprep.subr.bf16.mxu0 %v1952_v0 }
 0x3fd   : > { %1524 = vmatmul.mubr.msk.bf16.vlgmr.msra.gmra.mxu0 %vm541_vm2, %v833_v21 }
 0x3fe   : > { %1534 = vmatpush3.bf16.msra.mxu0 %v959_v22  ;;  %1535 = vmatprep.mubr.msk.bf16.mxu0 %vm1953_vm0, %v1952_v0 }
 0x3ff   : > { %1547 = vmatprep.subr.bf16.mxu0 %v1952_v0 }
 0x402   : > { %v1705_v23 = vpop.eup %1704 }
 0x403   : > { %v951_v24 = vmul.f32 %v1705_v23, %v1697_v62 }
 0x405   : > { %v952_v25 = vpack.c.bf16 %v951_v24, %v951_v24 }
 0x407   : > { %1536 = vmatmul.mubr.msk.bf16.vlgmr.msra.gmra.mxu0 %vm541_vm2, %v952_v25 }
 0x408   : > { %1551 = vmatprep.mubr.msk.bf16.mxu0 %vm1953_vm0, %v1952_v0  ;;  %1548 = vmatpush3.bf16.msra.mxu0 %v1684_v3 }
 0x409   : > { %1549 = vmatprep.subr.bf16.mxu0 %v1952_v0 }
 0x40c   : > { %1550 = vmatpush3.bf16.msra.mxu0 %v1685_v4 }
 0x490   : > { %v643_v26 = vpop.f32.mrf.mxu0 }
 0x491   : > { %v649_v27 = vpack.c.bf16 %v643_v26, %v643_v26 }
 0x492   : > { %v1501_v28 = vpop.f32.mrf.mxu0 }
 0x493   : > { %651 = vst.msk [vmem:[#allocation2] sm:$0xf] %vm650_vm4, %v649_v27 }
 0x494   : > { %v646_v29 = vpop.f32.mrf.mxu0 }
 0x496   : > { %v1502_v30 = vpop.f32.mrf.mxu0 }
 0x497   : > { %v1440_v30 = vld [vmem:[%s2384_s10] ss:$0 sm:$0xff] }
 0x498   : > { %v757_v31 = vpop.f32.mrf.mxu0 }
 0x499   : > { %v1450_v32 = vpack.c.bf16 %v757_v31, %v757_v31 }
 0x49a   : > { %v1513_v33 = vpop.f32.mrf.mxu0 }
 0x49b   : > { %767 = vrot.lane.b32.xlu1 %v1450_v32, %s1965_s2  ;;  %s1872_s2 = sshll.u32 %s1968_s8, 4  ;;  %s1873_s2 = int_to_ptr.vmem [resolvable:$false] %s1872_s2 }
 0x49c   : > { %v760_v34 = vpop.f32.mrf.mxu0  ;;  %s1874_s4 = scalar_lea.vmem %s1873_s2, 256  ;;  %p1875_p1 = scmp.lt.s32.totalorder %s2332_s28, %s1873_s2 }
 0x49d   : > { %p1876_p7 = scmp.lt.s32.totalorder %s1874_s4, %s1868_s23 }
 0x49e   : > { %v1514_v35 = vpop.f32.mrf.mxu0 }
 0x49f   : > { %p1877_p13 = por %p1876_p7, %p1875_p1 }
 0x4a1   : > { %p1878_p12 = pnand %p1877_p13, %p1871_p11 }
 0x4bd   : > { %v876_v37 = vpop.f32.mrf.mxu0 }
 0x4be   : > { %v1451_v38 = vpack.c.bf16 %v876_v37, %v876_v37 }
 0x4bf   : > { %v1525_v40 = vpop.f32.mrf.mxu0 }
 0x4c0   : > { %886 = vrot.lane.b32.xlu0 %v1451_v38, %s1966_s13 }
 0x4c1   : > { %v879_v41 = vpop.f32.mrf.mxu0 }
 0x4c3   : > { %v1526_v42 = vpop.f32.mrf.mxu0 }
 0x4c7   : > { %v995_v43 = vpop.f32.mrf.mxu0 }
 0x4c8   : > { %v1452_v44 = vpack.c.bf16 %v995_v43, %v995_v43 }
 0x4c9   : > { %v1537_v45 = vpop.f32.mrf.mxu0 }
 0x4ca   : > { %1005 = vrot.lane.b32.xlu1 %v1452_v44, %s1967_s12 }
 0x4cb   : > { %v998_v46 = vpop.f32.mrf.mxu0 }
 0x4cd   : > { %v1538_v47 = vpop.f32.mrf.mxu0 }
 0x50d   : > { %v768_v48 = vpop.permute.xlu1 %767 }
 0x50e   : > { %771 = vst.msk [vmem:[#allocation2] sm:$0xf] %vm770_vm5, %v768_v48 }
 0x532   : > { %v887_v49 = vpop.permute.xlu0 %886 }
 0x533   : > { %890 = vst.msk [vmem:[#allocation2] sm:$0xf] %vm889_vm6, %v887_v49 }
 0x53c   : > { %v1006_v50 = vpop.permute.xlu1 %1005 }
 0x53d   : > { %1009 = vst.msk [vmem:[#allocation2] sm:$0xf] %vm1008_vm7, %v1006_v50 }
 0x544   : > { %v1010_v51 = vld [vmem:[#allocation2] sm:$0xf] }
 0x545   : > { %1544 = vmatmul.mubr.msk.bf16.vlgmr.msra.gmra.mxu1 %vm491_vm1, %v1010_v51 }
 0x546   : > { %1563 = vmatprep.mubr.msk.bf16.mxu1 %vm1953_vm0, %v1952_v0  ;;  %1556 = vmatpush3.bf16.msra.mxu1 %v1686_v15 }
 0x547   : > { %1557 = vmatprep.subr.bf16.mxu1 %v1952_v0 }
 0x54a   : > { %1558 = vmatpush3.bf16.msra.mxu1 %v1687_v16 }
 0x54b   : > { %1559 = vmatprep.subr.bf16.mxu1 %v1952_v0 }
 0x54e   : > { %1560 = vmatpush3.bf16.msra.mxu1 %v1688_v17 }
 0x54f   : > { %1561 = vmatprep.subr.bf16.mxu1 %v1952_v0 }
 0x552   : > { %1562 = vmatpush3.bf16.msra.mxu1 %v1689_v18 }
 0x605   : > { %v1071_v54 = vpop.f32.mrf.mxu1 }
 0x606   : > { %v1072_v55 = vadd.f32 %v1430_v52, %v1071_v54 }
 0x607   : > { %v1545_v56 = vpop.f32.mrf.mxu1 }
 0x608   : > { %v1077_v57 = vadd.f32 %v1072_v55, %v467_v53 }
 0x609   : > { %v1074_v58 = vpop.f32.mrf.mxu1 }
 0x60a   : > { %v1078_v59 = vsel %vm491_vm1, %v1077_v57, 0.0 }
 0x60b   : > { %v1546_v60 = vpop.f32.mrf.mxu1  ;;  %1079 = vadd.xlane.f32.xlu0 %v1078_v59 }
 0x694   : > { %v1080_v61 = vpop.xlane.xlu0 %1079 }
 0x695   : > { %v1082_v62 = vmul.f32 0.03125, %v1080_v61 }
 0x697   : > { %v1083_v63 = vsub.f32 %v1077_v57, %v1082_v62 }
 0x699   : > { %v1084_v1 = vmul.f32 %v1083_v63, %v1083_v63 }
 0x69b   : > { %v1085_v2 = vsel %vm491_vm1, %v1084_v1, 0.0 }
 0x69c   : > { %1086 = vadd.xlane.f32.xlu1 %v1085_v2 }
 0x725   : > { %v1087_v5 = vpop.xlane.xlu1 %1086 }
 0x726   : > { %v1088_v6 = vmul.f32 0.03125, %v1087_v5 }
 0x728   : > { %v1089_v7 = vadd.f32 1e-05, %v1088_v6 }
 0x72a   : > { %1706 = vrsqrt.f32 %v1089_v7 }
 0x737   : > { %v1707_v8 = vpop.eup %1706 }
 0x738   : > { %v1091_v11 = vmul.f32 %v1707_v8, %v1083_v63 }
 0x73a   : > { %v1099_v13 = vmul.f32 %v1434_v10, %v1091_v11 }
 0x73c   : > { %v1107_v9 = vadd.f32 %v1435_v12, %v1099_v13 }
 0x73e   : > { %v1108_v14 = vpack.c.bf16 %v1107_v9, %v1107_v9 }
 0x740   : > { %1552 = vmatmul.mubr.msk.bf16.vlgmr.msra.gmra.mxu0 %vm491_vm1, %v1108_v14 }
 0x800   : > { %v1169_v20 = vpop.f32.mrf.mxu0 }
 0x801   : > { %v1170_v21 = vadd.f32 %v1436_v19, %v1169_v20 }
 0x802   : > { %v1553_v22 = vpop.f32.mrf.mxu0 }
 0x803   : > { %v1176_v23 = vmul.f32 0.70710677, %v1170_v21  ;;  %v1175_v27 = vmul.f32 0.5, %v1170_v21 }
 0x804   : > { %v1172_v24 = vpop.f32.mrf.mxu0 }
 0x805   : > { %1708 = verf.f32 %v1176_v23 }
 0x806   : > { %v1554_v25 = vpop.f32.mrf.mxu0 }
 0x812   : > { %v1709_v26 = vpop.eup %1708 }
 0x813   : > { %v1178_v28 = vadd.f32 1.0, %v1709_v26 }
 0x815   : > { %v1179_v29 = vmul.f32 %v1178_v28, %v1175_v27 }
 0x817   : > { %v1180_v0 = vpack.c.bf16 %v1179_v29, %v1179_v29 }
 0x819   : > { %1564 = vmatmul.mubr.msk.bf16.vlgmr.msra.gmra.mxu1 %vm1220_vm8, %v1180_v0 }
 0x8d9   : > { %v1258_v31 = vpop.f32.mrf.mxu1 }
 0x8da   : > { %v1259_v32 = vadd.f32 %v1440_v30, %v1258_v31 }
 0x8db   : > { %v1565_v33 = vpop.f32.mrf.mxu1 }
 0x8dc   : > { %1264 = vst.msk [vmem:[%s464_s21] sm:$0xff] %vm491_vm1, %v1259_v32 }
 0x8dd   : > { %v1261_v34 = vpop.f32.mrf.mxu1 }
 0x8de   : > { %1881 = shalt.err (!%p1878_p12)
}
 0x8df   : > { %s1882_s24 = scalar_lea.hbm %s2330_s6, 128  ;;  %s1886_s30 = scalar_lea.hbm %s2385_s11, 256 }
 0x8e0   : > { %p1883_p3 = scmp.ne.s32.totalorder %s2330_s6, %s1882_s24  ;;  %p1887_p0 = scmp.lt.s32.totalorder %s2330_s6, %s2385_s11 }
 0x8e1   : > { %p1888_p4 = scmp.lt.s32.totalorder %s1886_s30, %s1882_s24 }
 0x8e2   : > { %p1884_p9 = pnand %p1883_p3, %p2417_p8 }
 0x8e3   : > { %p1889_p2 = por %p1888_p4, %p1887_p0 }
 0x8e4   : > { %p1885_p6 = pneg %p1884_p9 }
 0x8e6   : > { %p1890_p5 = pnand %p1889_p2, %p1885_p6 }
 0x8e8   : > { %1893 = shalt.err (!%p1890_p5)
}
 0x8e9   : > { %1589 = dma.vmem_to_hbm [thread:$0]  (%p2417_p8), %s2332_s28, 128, %s2330_s6, %s1266_s15   ;;  %v1566_v35 = vpop.f32.mrf.mxu1 }
 0x8ea PF: > { %s1291_s16 = sand.u32 1, %s1932_s17   ;;  %p2418_p10 = scmp.ne.s32.totalorder %s2407_s22, 0 }
 0x8eb   : > { %p2419_p11 = scmp.ge.s32.totalorder %s1944_s20, 2  ;;  %s1292_s21 = scalar_lea.sflag [#allocation5], %s1291_s16 }
 0x8ed   : > { %p1612_p1 = pnand %p2419_p11, %p2418_p10 }
 0x8ef   : > { %p1613_p7 = pneg %p1612_p1 }
 0x8f1   : > { %1927 = dma.done.wait (%p1613_p7), %s1292_s21, 128  }
 0x8f2   : > { %1929 = vsyncadd (%p1613_p7), %s1292_s21, 4294967168  ;;  %s2420_s25 = sld [smem:[#allocation20_spill]]  ;;  %p27_p13 = scmp.ge.s32.totalorder %s2130_s29, 4  }
 0x8f3   : > { %s2421_s17 = smov %s1936_s18  ;;  %s2422_s18 = smov %s1940_s19 }
 0x8f4   : > { %s2424_s20 = smov %s2130_s29  ;;  %29 = sbr.rel (!%p27_p13) target bundleno = 14 (0xe), region = 129 }
 0x8f8   : > { %s2423_s19 = smov %s2420_s25 }
 0x8f9   :  { %1297 = vsyncpa [#allocation4], 1 }
 0x8fa   :  { %1299 = vsyncpa [#allocation4 + $0x1], 1 }
 0x8fb   :  { %1300 = vsyncpa [#allocation7], 1 }
 0x8fc   :  { %1301 = vsyncpa [#allocation10], 1 }
 0x8fd   :  { %1302 = vsyncpa [#allocation13], 1 }
 0x8fe   :  { %1303 = vsyncpa [#allocation5], 1 }
 0x8ff   :  { %1305 = vsyncpa [#allocation5 + $0x1], 1 }

// kernel: tpu_custom_call.1
= control target key start
LH: loop header
LB: loop body
LE: loop exit
PB: predicated region body
PF: predicated region fallthrough
CT: control target
= control target key end

     0   :  { %s2374_s0 = inlined_call_operand.hbm [shape: bf16[2,8,32], index: 0, kind: input, shape index: {}]   ;;  %s2375_s1 = inlined_call_operand.vmem [shape: bf16[32,96], index: 1, kind: input, shape index: {}]   ;;  %s2376_s2 = inlined_call_operand.hbm [shape: f32[1,96], index: 2, kind: input, shape index: {}]   ;;  %s2377_s3 = inlined_call_operand.vmem [shape: bf16[32,32], index: 3, kind: input, shape index: {}]   ;;  %s2378_s4 = inlined_call_operand.hbm [shape: f32[1,32], index: 4, kind: input, shape index: {}]   ;;  %s2379_s5 = inlined_call_operand.hbm [shape: f32[1,32], index: 5, kind: input, shape index: {}]   ;;  %s2380_s6 = inlined_call_operand.hbm [shape: f32[1,32], index: 6, kind: input, shape index: {}]   ;;  %s2381_s7 = inlined_call_operand.vmem [shape: bf16[32,64], index: 7, kind: input, shape index: {}]   ;;  %s2382_s8 = inlined_call_operand.hbm [shape: f32[1,64], index: 8, kind: input, shape index: {}]   ;;  %s2383_s9 = inlined_call_operand.vmem [shape: bf16[64,32], index: 9, kind: input, shape index: {}]   ;;  %s2384_s10 = inlined_call_operand.vmem [shape: f32[1,32], index: 10, kind: input, shape index: {}]   ;;  %s2385_s11 = inlined_call_operand.hbm [shape: f32[2,8,32], index: 11, kind: output, shape index: {}]  }
   0x1   :  { %2390 = sst [smem:[#allocation21_spill]] %s2376_s2 }
   0x2   :  { %2391 = sst [smem:[#allocation22_spill]] %s2378_s4 }
   0x3   :  { %2392 = sst [smem:[#allocation23_spill]] %s2379_s5 }
   0x4   :  { %2393 = sst [smem:[#allocation24_spill]] %s2380_s6 }
   0x5   :  { %2394 = sst [smem:[#allocation25_spill]] %s2382_s8 }
   0x6   :  { %16 = vsyncpa [#allocation4], 0 }
   0x7   :  { %18 = vsyncpa [#allocation4 + $0x1], 0 }
   0x8   :  { %19 = vsyncpa [#allocation7], 0 }
   0x9   :  { %20 = vsyncpa [#allocation10], 0 }
   0xa   :  { %21 = vsyncpa [#allocation13], 0 }
   0xb   :  { %22 = vsyncpa [#allocation5], 0 }
   0xc   :  { %24 = vsyncpa [#allocation5 + $0x1], 0  ;;  %s2029_s17 = smov 0   ;;  %s2031_s18 = smov 0  }
   0xd   :  { %s2033_s19 = smov 0   ;;  %s2035_s20 = smov 0  }
   0xe LB: > { %s1946_s21 = smov [#allocation6]   ;;  %s2050_s23 = sadd.s32 4294967295, %s1944_s20   ;;  %s1944_s20 = sphi %s2035_s20, %s2424_s20   ;;  %s1940_s19 = sphi %s2033_s19, %s2423_s19   ;;  %s1936_s18 = sphi %s2031_s18, %s2422_s18   ;;  %s1932_s17 = sphi %s2029_s17, %s2421_s17  }
   0xf   : > { %s313_s22 = sshll.u32 %s1946_s21, 4  ;;  %p1398_p0 = scmp.ge.s32.totalorder %s1944_s20, 1  ;;  %s314_s22 = int_to_ptr.vmem [resolvable:$true] %s313_s22 }
  0x10   : > { %p2386_p1 = scmp.eq.s32.totalorder %s2050_s23, 0  ;;  %p297_p2 = scmp.lt.s32.totalorder %s1944_s20, 3 }
  0x11   : > { %s1947_s25 = smov [#allocation9]   ;;  %s1948_s27 = smov [#allocation8]  }
  0x12   : > { %p2055_p3 = pnand %p1398_p0, %p297_p2  ;;  %s338_s26 = sshll.u32 %s1947_s25, 4  ;;  %s2062_s26 = int_to_ptr.vmem [resolvable:$true] %s338_s26 }
  0x13   : > { %s327_s28 = sshll.u32 %s1948_s27, 4  ;;  %s1949_s30 = smov [#allocation11]   ;;  %s2070_s28 = int_to_ptr.vmem [resolvable:$true] %s327_s28 }
  0x14   : > { %s2395_s24 = scalar_select %p2055_p3, 1, 0 }
  0x15   : > { %p1591_p5 = pneg %p2055_p3  ;;  %s2072_s12 = sshll.u32 %s1949_s30, 4  ;;  %s350_s12 = int_to_ptr.vmem [resolvable:$true] %s2072_s12 }
  0x16   : > { %s1721_s14 = scalar_lea.vmem %s314_s22, 16  ;;  %s1728_s15 = scalar_lea.vmem %s314_s22, 32 }
  0x17   : > { %p2066_p6 = pnand %p1591_p5, %p2386_p1  ;;  %p1722_p8 = scmp.ne.s32.totalorder %s314_s22, %s1721_s14 }
  0x18   : > { %p1729_p11 = scmp.lt.s32.totalorder %s314_s22, %s314_s22  ;;  %p1730_p12 = scmp.lt.s32.totalorder %s1728_s15, %s1721_s14 }
  0x19   : > { %p2076_p7 = pneg %p2066_p6 }
  0x1a   : > { %p1731_p13 = por %p1730_p12, %p1729_p11 }
  0x1b   : > { %p1724_p9 = pnand %p1722_p8, %p2076_p7 }
  0x1d   : > { %p1725_p10 = pneg %p1724_p9 }
  0x1f   : > { %p1732_p0 = pnand %p1731_p13, %p1725_p10 }
  0x21   : > { %1735 = shalt.err (!%p1732_p0)
}
  0x22   : > { %s2398_s2 = sld [smem:[#allocation21_spill]]  ;;  %s1747_s25 = scalar_lea.vmem %s2062_s26, 16 }
  0x23   : > { %p1748_p2 = scmp.ne.s32.totalorder %s2062_s26, %s1747_s25  ;;  %s1754_s27 = scalar_lea.vmem %s2062_s26, 32 }
  0x24   : > { %p1755_p9 = scmp.lt.s32.totalorder %s2062_s26, %s2062_s26  ;;  %p1756_p10 = scmp.lt.s32.totalorder %s1754_s27, %s1747_s25 }
  0x25   : > { %p1750_p5 = pnand %p1748_p2, %p2076_p7 }
  0x26   : > { %p1757_p11 = por %p1756_p10, %p1755_p9 }
  0x27   : > { %p1751_p8 = pneg %p1750_p5 }
  0x28   : > { %1594 = dma.hbm_to_vmem [thread:$0]  (!%p2066_p6), %s2398_s2, 16, %s314_s22, [#allocation7]  }
  0x29   : > { %p1758_p12 = pnand %p1757_p11, %p1751_p8 }
  0x2b   : > { %1761 = shalt.err (!%p1758_p12)
}
  0x2c   : > { %s2399_s5 = sld [smem:[#allocation23_spill]]  ;;  %s1773_s22 = scalar_lea.vmem %s2070_s28, 16 }
  0x2d   : > { %p1774_p13 = scmp.ne.s32.totalorder %s2070_s28, %s1773_s22  ;;  %s1780_s15 = scalar_lea.vmem %s2070_s28, 32 }
  0x2e   : > { %p1781_p5 = scmp.lt.s32.totalorder %s2070_s28, %s2070_s28  ;;  %p1782_p8 = scmp.lt.s32.totalorder %s1780_s15, %s1773_s22 }
  0x2f   : > { %p1776_p0 = pnand %p1774_p13, %p2076_p7 }
  0x30   : > { %p1783_p9 = por %p1782_p8, %p1781_p5 }
  0x31   : > { %p1777_p2 = pneg %p1776_p0 }
  0x32   : > { %1600 = dma.hbm_to_vmem [thread:$0]  (!%p2066_p6), %s2399_s5, 16, %s2062_s26, [#allocation10]  }
  0x33   : > { %p1784_p10 = pnand %p1783_p9, %p1777_p2 }
  0x35   : > { %1787 = shalt.err (!%p1784_p10)
}
  0x36   : > { %s2400_s4 = sld [smem:[#allocation22_spill]]  ;;  %s1950_s26 = smov [#allocation12]  }
  0x37   : > { %s363_s25 = sshll.u32 %s1950_s26, 4  ;;  %s1799_s27 = scalar_lea.vmem %s350_s12, 16  ;;  %s364_s25 = int_to_ptr.vmem [resolvable:$true] %s363_s25 }
  0x38   : > { %p1800_p11 = scmp.ne.s32.totalorder %s350_s12, %s1799_s27  ;;  %s1806_s30 = scalar_lea.vmem %s350_s12, 32 }
  0x39   : > { %p1807_p0 = scmp.lt.s32.totalorder %s350_s12, %s350_s12  ;;  %p1808_p2 = scmp.lt.s32.totalorder %s1806_s30, %s1799_s27 }
  0x3a   : > { %p1802_p12 = pnand %p1800_p11, %p2076_p7 }
  0x3b   : > { %p1809_p5 = por %p1808_p2, %p1807_p0 }
  0x3c   : > { %1597 = dma.hbm_to_vmem [thread:$0]  (!%p2066_p6), %s2400_s4, 16, %s2070_s28, [#allocation7]  }
  0x3d   : > { %p1803_p13 = pneg %p1802_p12 }
  0x3f   : > { %p1810_p8 = pnand %p1809_p5, %p1803_p13 }
  0x41   : > { %1813 = shalt.err (!%p1810_p8)
}
  0x42   : > { %s2401_s6 = sld [smem:[#allocation24_spill]]  ;;  %s1825_s28 = scalar_lea.vmem %s364_s25, 16 }
  0x43   : > { %p1826_p9 = scmp.ne.s32.totalorder %s364_s25, %s1825_s28  ;;  %s1832_s15 = scalar_lea.vmem %s364_s25, 32 }
  0x44   : > { %p1833_p12 = scmp.lt.s32.totalorder %s364_s25, %s364_s25  ;;  %p1834_p4 = scmp.lt.s32.totalorder %s1832_s15, %s1825_s28 }
  0x45   : > { %p1828_p10 = pnand %p1826_p9, %p2076_p7 }
  0x46   : > { %p1835_p1 = por %p1834_p4, %p1833_p12 }
  0x47   : > { %p1829_p11 = pneg %p1828_p10 }
  0x48   : > { %1603 = dma.hbm_to_vmem [thread:$0]  (!%p2066_p6), %s2401_s6, 16, %s350_s12, [#allocation10]  }
  0x49   : > { %p1836_p0 = pnand %p1835_p1, %p1829_p11 }
  0x4b   : > { %1839 = shalt.err (!%p1836_p0)
}
  0x4c   : > { %s2402_s8 = sld [smem:[#allocation25_spill]]  ;;  %s1397_s12 = sadd.s32 4294967294, %s1944_s20  }
  0x4d   : > { %s2130_s29 = sadd.s32 1, %s1944_s20   ;;  %s37_s13 = sadd.s32 1, %s1940_s19 }
  0x4e   : > { %s34_s26 = ssub.s32 %s1944_s20, %s2130_s29  ;;  %p44_p1 = scmp.ne.s32.totalorder %s1940_s19, %s1936_s18 }
  0x4f   : > { %p35_p4 = scmp.eq.s32.totalorder %s34_s26, 0  ;;  %p45_p7 = scmp.eq.s32.totalorder %s1944_s20, 0 }
  0x50   : > { %p50_p13 = scmp.ne.s32.totalorder %s1936_s18, %s1932_s17  ;;  %p284_p2 = scmp.eq.s32.totalorder %s2050_s23, 1 }
  0x51   : > { %s2142_s27 = scalar_select %p35_p4, %s1940_s19, %s37_s13  }
  0x52   : > { %1606 = dma.hbm_to_vmem [thread:$0]  (!%p2066_p6), %s2402_s8, 16, %s364_s25, [#allocation13]  }
  0x53   : > { %2403 = sst [smem:[#allocation20_spill]] %s2142_s27  ;;  %p46_p5 = por %p45_p7, %p44_p1 }
  0x54   : > { %p2404_p8 = scmp.eq.s32.totalorder %s2050_s23, 0  ;;  %p2150_p6 = por %p284_p2, %p44_p1 }
  0x55   : > { %p290_p10 = scmp.eq.s32.totalorder %s1397_s12, 1  ;;  %p1620_p11 = scmp.lt.s32.totalorder %s1944_s20, 2 }
  0x56   : > { %p2146_p9 = por %p2404_p8, %p50_p13  ;;  %s380_s14 = sand.u32 1, %s1940_s19  }
  0x57   : > { %s2406_s25 = scalar_select %p2150_p6, 1, 0 }
  0x58   : > { %s2405_s30 = scalar_select %p2146_p9, 1, 0 }
  0x59   : > { %p2156_p12 = por %p290_p10, %p50_p13  ;;  %s1405_s28 = sshll.u32 %s380_s14, 2 }
  0x5a   : > { %s1406_s15 = sshll.u32 %s1944_s20, 6  ;;  %s384_s26 = scalar_lea.vmem [#allocation3], %s1405_s28 }
  0x5b   : > { %s2407_s22 = scalar_select %p2156_p12, 1, 0 }
  0x5c   : > { %s2164_s13 = scalar_lea.hbm %s2374_s0, %s1406_s15  ;;  %s391_s2 = sshll.u32 %s384_s26, 4  ;;  %s392_s2 = int_to_ptr.vmem [resolvable:$true] %s391_s2 }
  0x5d   : > { %p2166_p0 = pnand %p1620_p11, %p46_p5  ;;  %s381_s4 = scalar_lea.sflag [#allocation4], %s380_s14 }
  0x5e   : > { %s1840_s5 = scalar_lea.hbm %s2164_s13, 64  ;;  %s1845_s21 = scalar_lea.hbm %s2374_s0, 128 }
  0x5f   : > { %p1841_p1 = scmp.ne.s32.totalorder %s2164_s13, %s1840_s5  ;;  %p1842_p4 = pneg %p2166_p0 }
  0x60   : > { %p1846_p2 = scmp.lt.s32.totalorder %s2164_s13, %s2374_s0  ;;  %p1847_p5 = scmp.lt.s32.totalorder %s1845_s21, %s1840_s5 }
  0x61   : > { %p1843_p7 = pnand %p1842_p4, %p1841_p1 }
  0x62   : > { %p1848_p8 = por %p1847_p5, %p1846_p2 }
  0x63   : > { %p1844_p13 = pneg %p1843_p7 }
  0x65   : > { %p1849_p10 = pnand %p1848_p8, %p1844_p13 }
  0x67   : > { %1852 = shalt.err (!%p1849_p10)
}
  0x68   : > { %s1853_s26 = scalar_lea.vmem %s392_s2, 64  ;;  %s1951_s14 = smov [#allocation3]  }
  0x69   : > { %p1854_p11 = scmp.ne.s32.totalorder %s392_s2, %s1853_s26  ;;  %s1858_s8 = sshll.u32 %s1951_s14, 4  ;;  %s1859_s8 = int_to_ptr.vmem [resolvable:$false] %s1858_s8 }
  0x6a   : > { %s1860_s27 = scalar_lea.vmem %s1859_s8, 128  ;;  %p1861_p1 = scmp.lt.s32.totalorder %s392_s2, %s1859_s8 }
  0x6b   : > { %p1856_p12 = pnand %p1854_p11, %p1842_p4  ;;  %p1862_p7 = scmp.lt.s32.totalorder %s1860_s27, %s1853_s26 }
  0x6d   : > { %p1857_p6 = pneg %p1856_p12  ;;  %p1863_p9 = por %p1862_p7, %p1861_p1 }
  0x6f   : > { %p1864_p3 = pnand %p1863_p9, %p1857_p6 }
  0x71   : > { %1867 = shalt.err (!%p1864_p3)
}
  0x72   : > { %1610 = dma.hbm_to_vmem [thread:$0]  (!%p2166_p0), %s2164_s13, 64, %s392_s2, %s381_s4  }
  0x73   : > { %p2409_p13 = scmp.ne.s32.totalorder %s2395_s24, 0 }
  0x74   : > { %s2187_s5 = sand.u32 (!%p2409_p13), 1, %s1936_s18   ;;  %p2410_p12 = scmp.ne.s32.totalorder (!%p2409_p13), %s2405_s30, 0 }
  0x75   : > { %400 = sbr.rel (%p2409_p13) target bundleno = 2282 (0x8ea), region = 64  ;;  %s1408_s6 = sshll.u32 (!%p2409_p13), %s2187_s5, 2 }
  0x76   : > { %s403_s15 = scalar_lea.sflag (!%p2409_p13), [#allocation4], %s2187_s5  ;;  %s406_s8 = scalar_lea.vmem (!%p2409_p13), [#allocation3], %s1408_s6 }
  0x7a   : > { %1911 = dma.done.wait (%p2410_p12), %s403_s15, 64  }
  0x7b   : > { %1913 = vsyncadd (%p2410_p12), %s403_s15, 4294967232  ;;  %p2411_p3 = scmp.eq.s32.totalorder %s2050_s23, 0 }
  0x7d   : > { %1915 = dma.done.wait (%p2411_p3), [#allocation7], 32   ;;  %p2412_p9 = pmov %p2411_p3 }
  0x7e   : > { %p2413_p6 = pmov %p2411_p3 }
  0x7f   : > { %1917 = vsyncadd (%p2412_p9), [#allocation7], 4294967264 }
  0x80   : > { %1919 = dma.done.wait (%p2413_p6), [#allocation10], 32   ;;  %p2414_p0 = pmov %p2411_p3 }
  0x82   : > { %1921 = vsyncadd (%p2414_p0), [#allocation10], 4294967264  ;;  %p2415_p4 = pmov %p2414_p0 }
  0x83   : > { %p2416_p2 = pmov %p2414_p0 }
  0x84   : > { %1923 = dma.done.wait (%p2415_p4), [#allocation13], 16  }
  0x85   : > { %1925 = vsyncadd (%p2416_p2), [#allocation13], 4294967280  ;;  %v1952_v0 = vmov 0.0   ;;  %vm1953_vm0 = vmmov 0   ;;  %v1680_v1 = vld [vmem:[%s2375_s1 + $0x8] sm:$0xff]   ;;  %v1681_v2 = vld [vmem:[%s2375_s1] sm:$0xff]  }
  0x86   : > { %1483 = vmatprep.subr.bf16.mxu0 %v1952_v0  ;;  %1487 = vmatprep.mubr.msk.bf16.mxu0 %vm1953_vm0, %v1952_v0  ;;  %vm491_vm1 = vcmask 261120   ;;  %v2220_v3 = vld [vmem:[%s406_s8] sm:$0xf]  ;;  %v1415_v4 = vld [vmem:[#allocation6] ss:$0 sm:$0xff]  ;;  %s1954_s30 = smov 96  }
  0x87   : > { %1491 = vmatprep.subr.bf16.mxu1 %v1952_v0  ;;  %1493 = vmatprep.mubr.msk.bf16.mxu1 %vm1953_vm0, %v1952_v0  ;;  %s1955_s13 = smov 120   ;;  %s1956_s12 = smov 88   ;;  %vm541_vm2 = vcmask 64512   ;;  %vm605_vm3 = vcmask 1043456   ;;  %vm650_vm4 = vcmask 60416   ;;  %vm770_vm5 = vcmask 126016  }
  0x88   : > { %1484 = vmatpush3.bf16.msra.mxu0 %v1680_v1  ;;  %s1957_s16 = smov 80   ;;  %s1958_s21 = smov 112   ;;  %vm889_vm6 = vcmask 191616   ;;  %vm1008_vm7 = vcmask 257216   ;;  %vm1220_vm8 = vcmask 523264  }
  0x89   : > { %1485 = vmatprep.subr.bf16.mxu0 %v1952_v0  ;;  %s1959_s28 = smov 72   ;;  %s1960_s26 = smov 104  }
  0x8a   : > { %s1961_s14 = smov 56   ;;  %s1962_s6 = smov 64  }
  0x8b   : > { %s1963_s15 = smov 40   ;;  %s1964_s8 = smov 48  }
  0x8c   : > { %1486 = vmatpush3.bf16.msra.mxu0 %v1681_v2  ;;  %s1965_s2 = smov 8   ;;  %p2417_p8 = scmp.ne.s32.totalorder %s2406_s25, 0 }
  0x8d   : > { %1497 = vmatprep.subr.bf16.mxu0 %v1952_v0 }
  0x8f   : > { %1488 = vmatmul.mubr.msk.bf16.vlgmr.msra.gmra.mxu0 %vm491_vm1, %v2220_v3 }
  0x90   : > { %1499 = vmatprep.mubr.msk.bf16.mxu0 %vm1953_vm0, %v1952_v0 }
 0x14f   : > { %v529_v5 = vpop.f32.mrf.mxu0 }
 0x150   : > { %v530_v6 = vadd.f32 %v1415_v4, %v529_v5 }
 0x151   : > { %v1489_v7 = vpop.f32.mrf.mxu0 }
 0x152   : > { %v535_v8 = vmul.f32 0.35355338, %v530_v6  ;;  %v2227_v9 = vpack.c.bf16 %v530_v6, %v530_v6 }
 0x153   : > { %v532_v10 = vpop.f32.mrf.mxu0 }
 0x154   : > { %v536_v11 = vpack.c.bf16 %v535_v8, %v535_v8  ;;  %539 = vrot.lane.b32.xlu0 %v2227_v9, %s1954_s30  ;;  %s1414_s30 = sshll.u32 %s2187_s5, 3 }
 0x155   : > { %v1490_v12 = vpop.f32.mrf.mxu0 }
 0x156   : > { %653 = vrot.lane.b32.xlu1 %v536_v11, %s1955_s13  ;;  %s1966_s13 = smov 16  }
 0x158   : > { %655 = vrot.lane.b32.xlu0 %v2227_v9, %s1956_s12  ;;  %s1967_s12 = smov 24  }
 0x15a   : > { %774 = vrot.lane.b32.xlu1 %v2227_v9, %s1957_s16  ;;  %s1447_s16 = sshll.u32 %s2050_s23, 7 }
 0x15c   : > { %772 = vrot.lane.b32.xlu0 %v536_v11, %s1958_s21  ;;  %s464_s21 = scalar_lea.vmem [#allocation14], %s1414_s30 }
 0x15e   : > { %893 = vrot.lane.b32.xlu1 %v2227_v9, %s1959_s28  ;;  %s1279_s28 = sshll.u32 %s464_s21, 4  ;;  %s2332_s28 = int_to_ptr.vmem [resolvable:$true] %s1279_s28 }
 0x15f   : > { %s1868_s23 = scalar_lea.vmem %s2332_s28, 128 }
 0x160   : > { %891 = vrot.lane.b32.xlu0 %v536_v11, %s1960_s26  ;;  %p1869_p5 = scmp.ne.s32.totalorder %s2332_s28, %s1868_s23 }
 0x162   : > { %p1870_p10 = pnand %p1869_p5, %p2417_p8 }
 0x164   : > { %p1871_p11 = pneg %p1870_p10 }
 0x1c6   : > { %v540_v13 = vpop.permute.xlu0 %539 }
 0x1c7   : > { %v546_v14 = vsel %vm541_vm2, %v540_v13, 0 }
 0x1c8   : > { %1492 = vmatpush3.bf16.xpose.msra.mxu1 %v546_v14  ;;  %v654_v16 = vpop.permute.xlu1 %653 }
 0x1c9   : > { %1503 = vmatprep.subr.bf16.mxu1 %v1952_v0 }
 0x1ca   : > { %v656_v15 = vpop.permute.xlu0 %655 }
 0x1cb   : > { %v661_v17 = vsel %vm541_vm2, %v656_v15, 0 }
 0x1cc   : > { %v775_v18 = vpop.permute.xlu1 %774 }
 0x1cd   : > { %v780_v19 = vsel %vm541_vm2, %v775_v18, 0 }
 0x1ce   : > { %v773_v21 = vpop.permute.xlu0 %772 }
 0x1cf   : > { %1494 = vmatmul.mubr.msk.bf16.vlgmr.msra.gmra.mxu1 %vm541_vm2, %v536_v11 }
 0x1d0   : > { %1504 = vmatpush3.bf16.xpose.msra.mxu1 %v661_v17  ;;  %1505 = vmatprep.mubr.msk.bf16.mxu1 %vm1953_vm0, %v1952_v0  ;;  %v894_v20 = vpop.permute.xlu1 %893 }
 0x1d1   : > { %1515 = vmatprep.subr.bf16.mxu1 %v1952_v0  ;;  %v899_v22 = vsel %vm541_vm2, %v894_v20, 0 }
 0x1d2   : > { %v892_v23 = vpop.permute.xlu0 %891 }
 0x1d7   : > { %1506 = vmatmul.mubr.msk.bf16.vlgmr.msra.gmra.mxu1 %vm541_vm2, %v654_v16 }
 0x1d8   : > { %1516 = vmatpush3.bf16.xpose.msra.mxu1 %v780_v19  ;;  %1517 = vmatprep.mubr.msk.bf16.mxu1 %vm1953_vm0, %v1952_v0 }
 0x1d9   : > { %1527 = vmatprep.subr.bf16.mxu1 %v1952_v0 }
 0x1df   : > { %1518 = vmatmul.mubr.msk.bf16.vlgmr.msra.gmra.mxu1 %vm541_vm2, %v773_v21 }
 0x1e0   : > { %1528 = vmatpush3.bf16.xpose.msra.mxu1 %v899_v22  ;;  %1529 = vmatprep.mubr.msk.bf16.mxu1 %vm1953_vm0, %v1952_v0 }
 0x1e1   : > { %1539 = vmatprep.subr.bf16.mxu1 %v1952_v0 }
 0x1e7   : > { %1530 = vmatmul.mubr.msk.bf16.vlgmr.msra.gmra.mxu1 %vm541_vm2, %v892_v23 }
 0x1e8   : > { %1543 = vmatprep.mubr.msk.bf16.mxu1 %vm1953_vm0, %v1952_v0 }
 0x28f   : > { %v582_v24 = vpop.f32.mrf.mxu1 }
 0x290   : > { %v588_v25 = vsel %vm541_vm2, %v582_v24, -inf }
 0x291   : > { %589 = vmax.xlane.f32.xlu1 %v588_v25  ;;  %v1495_v26 = vpop.f32.mrf.mxu1 }
 0x293   : > { %v585_v27 = vpop.f32.mrf.mxu1 }
 0x295   : > { %v1496_v28 = vpop.f32.mrf.mxu1 }
 0x297   : > { %v697_v29 = vpop.f32.mrf.mxu1 }
 0x298   : > { %v703_v30 = vsel %vm541_vm2, %v697_v29, -inf }
 0x299   : > { %704 = vmax.xlane.f32.xlu0 %v703_v30  ;;  %v1507_v31 = vpop.f32.mrf.mxu1 }
 0x29b   : > { %v700_v32 = vpop.f32.mrf.mxu1 }
 0x29d   : > { %v1508_v33 = vpop.f32.mrf.mxu1 }
 0x29f   : > { %v816_v34 = vpop.f32.mrf.mxu1 }
 0x2a0   : > { %v822_v35 = vsel %vm541_vm2, %v816_v34, -inf }
 0x2a1   : > { %823 = vmax.xlane.f32.xlu0 %v822_v35  ;;  %v1519_v36 = vpop.f32.mrf.mxu1 }
 0x2a2   : > { %v1682_v36 = vld [vmem:[%s2377_s3 + $0x8] sm:$0xff]  }
 0x2a3   : > { %v819_v37 = vpop.f32.mrf.mxu1  ;;  %1540 = vmatpush3.bf16.msra.mxu1 %v1682_v36 }
 0x2a4   : > { %1541 = vmatprep.subr.bf16.mxu1 %v1952_v0 }
 0x2a5   : > { %v1520_v38 = vpop.f32.mrf.mxu1 }
 0x2a7   : > { %v935_v39 = vpop.f32.mrf.mxu1 }
 0x2a8   : > { %v941_v40 = vsel %vm541_vm2, %v935_v39, -inf }
 0x2a9   : > { %942 = vmax.xlane.f32.xlu1 %v941_v40  ;;  %v1531_v41 = vpop.f32.mrf.mxu1 }
 0x2ab   : > { %v938_v42 = vpop.f32.mrf.mxu1 }
 0x2ad   : > { %v1532_v43 = vpop.f32.mrf.mxu1 }
 0x31a   : > { %v590_v44 = vpop.xlane.xlu1 %589 }
 0x31b   : > { %v591_v45 = vsub.f32 %v582_v24, %v590_v44 }
 0x31d   : > { %v592_v46 = vmul.f32 1.442695, %v591_v45 }
 0x31f   : > { %1690 = vpow2.f32 %v592_v46 }
 0x322   : > { %v705_v47 = vpop.xlane.xlu0 %704 }
 0x323   : > { %v706_v48 = vsub.f32 %v697_v29, %v705_v47 }
 0x325   : > { %v707_v49 = vmul.f32 1.442695, %v706_v48 }
 0x327   : > { %1692 = vpow2.f32 %v707_v49 }
 0x32a   : > { %v824_v50 = vpop.xlane.xlu0 %823 }
 0x32b   : > { %v825_v51 = vsub.f32 %v816_v34, %v824_v50 }
 0x32c   : > { %v1691_v52 = vpop.eup %1690 }
 0x32d   : > { %v826_v53 = vmul.f32 1.442695, %v825_v51  ;;  %v594_v54 = vsel %vm541_vm2, %v1691_v52, 0.0 }
 0x32e   : > { %595 = vadd.xlane.f32.xlu0 %v594_v54 }
 0x32f   : > { %1694 = vpow2.f32 %v826_v53  ;;  %v467_v53 = vunpack.c.l.bf16 %v2220_v3  ;;  %v1684_v3 = vld [vmem:[%s2381_s7 + $0x8] sm:$0xff]  }
 0x332   : > { %v943_v59 = vpop.xlane.xlu1 %942 }
 0x333   : > { %v944_v60 = vsub.f32 %v935_v39, %v943_v59  ;;  %v1683_v39 = vld [vmem:[%s2377_s3] sm:$0xff]  }
 0x334   : > { %v1693_v55 = vpop.eup %1692  ;;  %1542 = vmatpush3.bf16.msra.mxu1 %v1683_v39 }
 0x335   : > { %v709_v56 = vsel %vm541_vm2, %v1693_v55, 0.0  ;;  %v945_v61 = vmul.f32 1.442695, %v944_v60  ;;  %1555 = vmatprep.subr.bf16.mxu1 %v1952_v0 }
 0x336   : > { %710 = vadd.xlane.f32.xlu1 %v709_v56 }
 0x337   : > { %1696 = vpow2.f32 %v945_v61 }
 0x33c   : > { %v1695_v57 = vpop.eup %1694 }
 0x33d   : > { %v828_v58 = vsel %vm541_vm2, %v1695_v57, 0.0 }
 0x33e   : > { %829 = vadd.xlane.f32.xlu0 %v828_v58 }
 0x344   : > { %v1697_v62 = vpop.eup %1696 }
 0x345   : > { %v947_v63 = vsel %vm541_vm2, %v1697_v62, 0.0 }
 0x347   : > { %715 = vrot.lane.b32.xlu1 %v2227_v9, %s1961_s14 }
 0x354   : > { %600 = vrot.lane.b32.xlu0 %v2227_v9, %s1962_s6  ;;  %s2330_s6 = scalar_lea.hbm %s2385_s11, %s1447_s16 }
 0x358   : > { %953 = vrot.lane.b32.xlu0 %v2227_v9, %s1963_s15  ;;  %s1266_s15 = scalar_lea.sflag [#allocation5], %s2187_s5 }
 0x36b   : > { %948 = vadd.xlane.f32.xlu1 %v947_v63 }
 0x37c   : > { %834 = vrot.lane.b32.xlu1 %v2227_v9, %s1964_s8  ;;  %s1968_s8 = smov [#allocation14]  }
 0x3b7   : > { %v596_v1 = vpop.xlane.xlu0 %595 }
 0x3b8   : > { %1698 = vrcp.f32 %v596_v1 }
 0x3bf   : > { %v711_v2 = vpop.xlane.xlu1 %710 }
 0x3c0   : > { %1700 = vrcp.f32 %v711_v2 }
 0x3c3   : > { %v716_v10 = vpop.permute.xlu1 %715 }
 0x3c4   : > { %v721_v13 = vsel %vm605_vm3, %v716_v10, 0  ;;  %v1434_v10 = vld [vmem:[#allocation9] ss:$0 sm:$0xff] }
 0x3c5   : > { %v1699_v4 = vpop.eup %1698 }
 0x3c6   : > { %v598_v6 = vmul.f32 %v1699_v4, %v1691_v52  ;;  %v1430_v52 = vld [vmem:[#allocation8] ss:$0 sm:$0xff]  ;;  %v1685_v4 = vld [vmem:[%s2381_s7] sm:$0xff]  }
 0x3c7   : > { %v830_v5 = vpop.xlane.xlu0 %829 }
 0x3c8   : > { %v599_v11 = vpack.c.bf16 %v598_v6, %v598_v6  ;;  %1702 = vrcp.f32 %v830_v5 }
 0x3cb   : > { %v601_v7 = vpop.permute.xlu0 %600 }
 0x3cc   : > { %v607_v8 = vsel %vm605_vm3, %v601_v7, 0 }
 0x3cd   : > { %1498 = vmatpush3.bf16.msra.mxu0 %v607_v8  ;;  %v1701_v12 = vpop.eup %1700 }
 0x3ce   : > { %1509 = vmatprep.subr.bf16.mxu0 %v1952_v0  ;;  %v713_v9 = vmul.f32 %v1701_v12, %v1693_v55  ;;  %v1435_v12 = vld [vmem:[#allocation11] ss:$0 sm:$0xff] }
 0x3cf   : > { %v954_v20 = vpop.permute.xlu0 %953 }
 0x3d0   : > { %1500 = vmatmul.mubr.msk.bf16.vlgmr.msra.gmra.mxu0 %vm541_vm2, %v599_v11  ;;  %v714_v14 = vpack.c.bf16 %v713_v9, %v713_v9  ;;  %v959_v22 = vsel %vm605_vm3, %v954_v20, 0 }
 0x3d1   : > { %1510 = vmatpush3.bf16.msra.mxu0 %v721_v13  ;;  %1511 = vmatprep.mubr.msk.bf16.mxu0 %vm1953_vm0, %v1952_v0 }
 0x3d2   : > { %1521 = vmatprep.subr.bf16.mxu0 %v1952_v0 }
 0x3d5   : > { %v1703_v15 = vpop.eup %1702 }
 0x3d6   : > { %v832_v17 = vmul.f32 %v1703_v15, %v1695_v57  ;;  %v1686_v15 = vld [vmem:[%s2383_s9 + $0x18] sm:$0xff]  }
 0x3d8   : > { %1512 = vmatmul.mubr.msk.bf16.vlgmr.msra.gmra.mxu0 %vm541_vm2, %v714_v14  ;;  %v833_v21 = vpack.c.bf16 %v832_v17, %v832_v17  ;;  %v1688_v17 = vld [vmem:[%s2383_s9 + $0x8] sm:$0xff]  }
 0x3d9   : > { %1523 = vmatprep.mubr.msk.bf16.mxu0 %vm1953_vm0, %v1952_v0 }
 0x3f4   : > { %v949_v16 = vpop.xlane.xlu1 %948 }
 0x3f5   : > { %1704 = vrcp.f32 %v949_v16  ;;  %v1687_v16 = vld [vmem:[%s2383_s9 + $0x10] sm:$0xff]  }
 0x3f8   : > { %v835_v18 = vpop.permute.xlu1 %834 }
 0x3f9   : > { %v840_v19 = vsel %vm605_vm3, %v835_v18, 0  ;;  %v1689_v18 = vld [vmem:[%s2383_s9] sm:$0xff]  }
 0x3fa   : > { %1522 = vmatpush3.bf16.msra.mxu0 %v840_v19  ;;  %v1436_v19 = vld [vmem:[#allocation12] ss:$0 sm:$0xff] }
 0x3fb   : > { %1533 = vmatprep.subr.bf16.mxu0 %v1952_v0 }
 0x3fd   : > { %1524 = vmatmul.mubr.msk.bf16.vlgmr.msra.gmra.mxu0 %vm541_vm2, %v833_v21 }
 0x3fe   : > { %1534 = vmatpush3.bf16.msra.mxu0 %v959_v22  ;;  %1535 = vmatprep.mubr.msk.bf16.mxu0 %vm1953_vm0, %v1952_v0 }
 0x3ff   : > { %1547 = vmatprep.subr.bf16.mxu0 %v1952_v0 }
 0x402   : > { %v1705_v23 = vpop.eup %1704 }
 0x403   : > { %v951_v24 = vmul.f32 %v1705_v23, %v1697_v62 }
 0x405   : > { %v952_v25 = vpack.c.bf16 %v951_v24, %v951_v24 }
 0x407   : > { %1536 = vmatmul.mubr.msk.bf16.vlgmr.msra.gmra.mxu0 %vm541_vm2, %v952_v25 }
 0x408   : > { %1551 = vmatprep.mubr.msk.bf16.mxu0 %vm1953_vm0, %v1952_v0  ;;  %1548 = vmatpush3.bf16.msra.mxu0 %v1684_v3 }
 0x409   : > { %1549 = vmatprep.subr.bf16.mxu0 %v1952_v0 }
 0x40c   : > { %1550 = vmatpush3.bf16.msra.mxu0 %v1685_v4 }
 0x490   : > { %v643_v26 = vpop.f32.mrf.mxu0 }
 0x491   : > { %v649_v27 = vpack.c.bf16 %v643_v26, %v643_v26 }
 0x492   : > { %v1501_v28 = vpop.f32.mrf.mxu0 }
 0x493   : > { %651 = vst.msk [vmem:[#allocation2] sm:$0xf] %vm650_vm4, %v649_v27 }
 0x494   : > { %v646_v29 = vpop.f32.mrf.mxu0 }
 0x496   : > { %v1502_v30 = vpop.f32.mrf.mxu0 }
 0x497   : > { %v1440_v30 = vld [vmem:[%s2384_s10] ss:$0 sm:$0xff] }
 0x498   : > { %v757_v31 = vpop.f32.mrf.mxu0 }
 0x499   : > { %v1450_v32 = vpack.c.bf16 %v757_v31, %v757_v31 }
 0x49a   : > { %v1513_v33 = vpop.f32.mrf.mxu0 }
 0x49b   : > { %767 = vrot.lane.b32.xlu1 %v1450_v32, %s1965_s2  ;;  %s1872_s2 = sshll.u32 %s1968_s8, 4  ;;  %s1873_s2 = int_to_ptr.vmem [resolvable:$false] %s1872_s2 }
 0x49c   : > { %v760_v34 = vpop.f32.mrf.mxu0  ;;  %s1874_s4 = scalar_lea.vmem %s1873_s2, 256  ;;  %p1875_p1 = scmp.lt.s32.totalorder %s2332_s28, %s1873_s2 }
 0x49d   : > { %p1876_p7 = scmp.lt.s32.totalorder %s1874_s4, %s1868_s23 }
 0x49e   : > { %v1514_v35 = vpop.f32.mrf.mxu0 }
 0x49f   : > { %p1877_p13 = por %p1876_p7, %p1875_p1 }
 0x4a1   : > { %p1878_p12 = pnand %p1877_p13, %p1871_p11 }
 0x4bd   : > { %v876_v37 = vpop.f32.mrf.mxu0 }
 0x4be   : > { %v1451_v38 = vpack.c.bf16 %v876_v37, %v876_v37 }
 0x4bf   : > { %v1525_v40 = vpop.f32.mrf.mxu0 }
 0x4c0   : > { %886 = vrot.lane.b32.xlu0 %v1451_v38, %s1966_s13 }
 0x4c1   : > { %v879_v41 = vpop.f32.mrf.mxu0 }
 0x4c3   : > { %v1526_v42 = vpop.f32.mrf.mxu0 }
 0x4c7   : > { %v995_v43 = vpop.f32.mrf.mxu0 }
 0x4c8   : > { %v1452_v44 = vpack.c.bf16 %v995_v43, %v995_v43 }
 0x4c9   : > { %v1537_v45 = vpop.f32.mrf.mxu0 }
 0x4ca   : > { %1005 = vrot.lane.b32.xlu1 %v1452_v44, %s1967_s12 }
 0x4cb   : > { %v998_v46 = vpop.f32.mrf.mxu0 }
 0x4cd   : > { %v1538_v47 = vpop.f32.mrf.mxu0 }
 0x50d   : > { %v768_v48 = vpop.permute.xlu1 %767 }
 0x50e   : > { %771 = vst.msk [vmem:[#allocation2] sm:$0xf] %vm770_vm5, %v768_v48 }
 0x532   : > { %v887_v49 = vpop.permute.xlu0 %886 }
 0x533   : > { %890 = vst.msk [vmem:[#allocation2] sm:$0xf] %vm889_vm6, %v887_v49 }
 0x53c   : > { %v1006_v50 = vpop.permute.xlu1 %1005 }
 0x53d   : > { %1009 = vst.msk [vmem:[#allocation2] sm:$0xf] %vm1008_vm7, %v1006_v50 }
 0x544   : > { %v1010_v51 = vld [vmem:[#allocation2] sm:$0xf] }
 0x545   : > { %1544 = vmatmul.mubr.msk.bf16.vlgmr.msra.gmra.mxu1 %vm491_vm1, %v1010_v51 }
 0x546   : > { %1563 = vmatprep.mubr.msk.bf16.mxu1 %vm1953_vm0, %v1952_v0  ;;  %1556 = vmatpush3.bf16.msra.mxu1 %v1686_v15 }
 0x547   : > { %1557 = vmatprep.subr.bf16.mxu1 %v1952_v0 }
 0x54a   : > { %1558 = vmatpush3.bf16.msra.mxu1 %v1687_v16 }
 0x54b   : > { %1559 = vmatprep.subr.bf16.mxu1 %v1952_v0 }
 0x54e   : > { %1560 = vmatpush3.bf16.msra.mxu1 %v1688_v17 }
 0x54f   : > { %1561 = vmatprep.subr.bf16.mxu1 %v1952_v0 }
 0x552   : > { %1562 = vmatpush3.bf16.msra.mxu1 %v1689_v18 }
 0x605   : > { %v1071_v54 = vpop.f32.mrf.mxu1 }
 0x606   : > { %v1072_v55 = vadd.f32 %v1430_v52, %v1071_v54 }
 0x607   : > { %v1545_v56 = vpop.f32.mrf.mxu1 }
 0x608   : > { %v1077_v57 = vadd.f32 %v1072_v55, %v467_v53 }
 0x609   : > { %v1074_v58 = vpop.f32.mrf.mxu1 }
 0x60a   : > { %v1078_v59 = vsel %vm491_vm1, %v1077_v57, 0.0 }
 0x60b   : > { %v1546_v60 = vpop.f32.mrf.mxu1  ;;  %1079 = vadd.xlane.f32.xlu0 %v1078_v59 }
 0x694   : > { %v1080_v61 = vpop.xlane.xlu0 %1079 }
 0x695   : > { %v1082_v62 = vmul.f32 0.03125, %v1080_v61 }
 0x697   : > { %v1083_v63 = vsub.f32 %v1077_v57, %v1082_v62 }
 0x699   : > { %v1084_v1 = vmul.f32 %v1083_v63, %v1083_v63 }
 0x69b   : > { %v1085_v2 = vsel %vm491_vm1, %v1084_v1, 0.0 }
 0x69c   : > { %1086 = vadd.xlane.f32.xlu1 %v1085_v2 }
 0x725   : > { %v1087_v5 = vpop.xlane.xlu1 %1086 }
 0x726   : > { %v1088_v6 = vmul.f32 0.03125, %v1087_v5 }
 0x728   : > { %v1089_v7 = vadd.f32 1e-05, %v1088_v6 }
 0x72a   : > { %1706 = vrsqrt.f32 %v1089_v7 }
 0x737   : > { %v1707_v8 = vpop.eup %1706 }
 0x738   : > { %v1091_v11 = vmul.f32 %v1707_v8, %v1083_v63 }
 0x73a   : > { %v1099_v13 = vmul.f32 %v1434_v10, %v1091_v11 }
 0x73c   : > { %v1107_v9 = vadd.f32 %v1435_v12, %v1099_v13 }
 0x73e   : > { %v1108_v14 = vpack.c.bf16 %v1107_v9, %v1107_v9 }
 0x740   : > { %1552 = vmatmul.mubr.msk.bf16.vlgmr.msra.gmra.mxu0 %vm491_vm1, %v1108_v14 }
 0x800   : > { %v1169_v20 = vpop.f32.mrf.mxu0 }
 0x801   : > { %v1170_v21 = vadd.f32 %v1436_v19, %v1169_v20 }
 0x802   : > { %v1553_v22 = vpop.f32.mrf.mxu0 }
 0x803   : > { %v1176_v23 = vmul.f32 0.70710677, %v1170_v21  ;;  %v1175_v27 = vmul.f32 0.5, %v1170_v21 }
 0x804   : > { %v1172_v24 = vpop.f32.mrf.mxu0 }
 0x805   : > { %1708 = verf.f32 %v1176_v23 }
 0x806   : > { %v1554_v25 = vpop.f32.mrf.mxu0 }
 0x812   : > { %v1709_v26 = vpop.eup %1708 }
 0x813   : > { %v1178_v28 = vadd.f32 1.0, %v1709_v26 }
 0x815   : > { %v1179_v29 = vmul.f32 %v1178_v28, %v1175_v27 }
 0x817   : > { %v1180_v0 = vpack.c.bf16 %v1179_v29, %v1179_v29 }
 0x819   : > { %1564 = vmatmul.mubr.msk.bf16.vlgmr.msra.gmra.mxu1 %vm1220_vm8, %v1180_v0 }
 0x8d9   : > { %v1258_v31 = vpop.f32.mrf.mxu1 }
 0x8da   : > { %v1259_v32 = vadd.f32 %v1440_v30, %v1258_v31 }
 0x8db   : > { %v1565_v33 = vpop.f32.mrf.mxu1 }
 0x8dc   : > { %1264 = vst.msk [vmem:[%s464_s21] sm:$0xff] %vm491_vm1, %v1259_v32 }
 0x8dd   : > { %v1261_v34 = vpop.f32.mrf.mxu1 }
 0x8de   : > { %1881 = shalt.err (!%p1878_p12)
}
 0x8df   : > { %s1882_s24 = scalar_lea.hbm %s2330_s6, 128  ;;  %s1886_s30 = scalar_lea.hbm %s2385_s11, 256 }
 0x8e0   : > { %p1883_p3 = scmp.ne.s32.totalorder %s2330_s6, %s1882_s24  ;;  %p1887_p0 = scmp.lt.s32.totalorder %s2330_s6, %s2385_s11 }
 0x8e1   : > { %p1888_p4 = scmp.lt.s32.totalorder %s1886_s30, %s1882_s24 }
 0x8e2   : > { %p1884_p9 = pnand %p1883_p3, %p2417_p8 }
 0x8e3   : > { %p1889_p2 = por %p1888_p4, %p1887_p0 }
 0x8e4   : > { %p1885_p6 = pneg %p1884_p9 }
 0x8e6   : > { %p1890_p5 = pnand %p1889_p2, %p1885_p6 }
 0x8e8   : > { %1893 = shalt.err (!%p1890_p5)
}
 0x8e9   : > { %1589 = dma.vmem_to_hbm [thread:$0]  (%p2417_p8), %s2332_s28, 128, %s2330_s6, %s1266_s15   ;;  %v1566_v35 = vpop.f32.mrf.mxu1 }
 0x8ea PF: > { %s1291_s16 = sand.u32 1, %s1932_s17   ;;  %p2418_p10 = scmp.ne.s32.totalorder %s2407_s22, 0 }
 0x8eb   : > { %p2419_p11 = scmp.ge.s32.totalorder %s1944_s20, 2  ;;  %s1292_s21 = scalar_lea.sflag [#allocation5], %s1291_s16 }
 0x8ed   : > { %p1612_p1 = pnand %p2419_p11, %p2418_p10 }
 0x8ef   : > { %p1613_p7 = pneg %p1612_p1 }
 0x8f1   : > { %1927 = dma.done.wait (%p1613_p7), %s1292_s21, 128  }
 0x8f2   : > { %1929 = vsyncadd (%p1613_p7), %s1292_s21, 4294967168  ;;  %s2420_s25 = sld [smem:[#allocation20_spill]]  ;;  %p27_p13 = scmp.ge.s32.totalorder %s2130_s29, 4  }
 0x8f3   : > { %s2421_s17 = smov %s1936_s18  ;;  %s2422_s18 = smov %s1940_s19 }
 0x8f4   : > { %s2424_s20 = smov %s2130_s29  ;;  %29 = sbr.rel (!%p27_p13) target bundleno = 14 (0xe), region = 129 }
 0x8f8   : > { %s2423_s19 = smov %s2420_s25 }
 0x8f9   :  { %1297 = vsyncpa [#allocation4], 1 }
 0x8fa   :  { %1299 = vsyncpa [#allocation4 + $0x1], 1 }
 0x8fb   :  { %1300 = vsyncpa [#allocation7], 1 }
 0x8fc   :  { %1301 = vsyncpa [#allocation10], 1 }
 0x8fd   :  { %1302 = vsyncpa [#allocation13], 1 }
 0x8fe   :  { %1303 = vsyncpa [#allocation5], 1 }
 0x8ff   :  { %1305 = vsyncpa [#allocation5 + $0x1], 1 }

</bundles_post_ra>
